<compile_context>
chip_gen: v6e
topology: v6e:2x2x1
jax: 0.10.0
libtpu: 0.0.40
codegen_flags: <defaults>
</compile_context>

<pallas_src>
import jax
import jax.numpy as jnp
from jax.experimental import pallas as pl
from jax.experimental.pallas import tpu as pltpu


NODEMB = 64
EDGEMB = 64
NODEFEAT = 2
NUM_ITERS = 16


def _round_up(x, m):
    return (x + m - 1) // m * m


def _dot(a, b):
    return jnp.dot(a, b, preferred_element_type=jnp.float32)


def _small_proj(x, w):
    """x @ w for tiny K (1-2 rows): VPU broadcast mul-adds instead of MXU."""
    acc = x[:, 0:1] * w[0:1, :]
    for i in range(1, w.shape[0]):
        acc = acc + x[:, i:i + 1] * w[i:i + 1, :]
    return acc


# ----------------------------------------------------------------------------
# Fused kernel: node_init + 16x(update_all) + edge classifier
# ----------------------------------------------------------------------------
def _fused_kernel(
    nf_ref, dist_ref, gsrc_ref, gdst_ref, agg_ref,
    ni_w1, ni_b1, ni_w2, ni_b2,
    en_w1_df, en_w1_sf, en_w1_hh, en_w1_di, en_b1, en_w2, en_b2,
    nn_w1_h, nn_w1_f, nn_w1_a, nn_b1, nn_w2, nn_b2,
    ec_w1_df, ec_w1_dh, ec_w1_sf, ec_w1_sh, ec_w1_di, ec_b1, ec_w2_row, ec_b2,
    out_ref,
):
    nf = nf_ref[...]          # [Np, 2]   node features (padded)
    dist = dist_ref[...]      # [Ep, 1]   edge distances (padded)
    g_src = gsrc_ref[...]     # [Ep, Np]  one-hot gather (source node per edge)
    g_dst = gdst_ref[...]     # [Ep, Np]  one-hot gather (dest node per edge)
    agg = agg_ref[...]        # [Np, Ep]  incidence (sum messages per dst node)

    # ---- node_init MLP: Linear(2,128)+ReLU -> Linear(128,64)+ReLU ----------
    h0 = jnp.maximum(_small_proj(nf, ni_w1[...]) + ni_b1[...], 0.0)     # [Np,128]
    hid0 = jnp.maximum(_dot(h0, ni_w2[...]) + ni_b2[...], 0.0)          # [Np, 64]

    # ---- loop-invariant parts of the first-layer preactivations ------------
    en_static = (_dot(g_dst, _small_proj(nf, en_w1_df[...]))
                 + _dot(g_src, _small_proj(nf, en_w1_sf[...]))
                 + dist * en_w1_di[...] + en_b1[...])                   # [Ep,128]
    nn_static = _small_proj(nf, nn_w1_f[...]) + nn_b1[...]              # [Np,128]

    en_w1_hh_v = en_w1_hh[...]                    # [64, 256] = [W_dst_hid | W_src_hid]
    en_w2_v, en_b2_v = en_w2[...], en_b2[...]
    nn_w1_h_v, nn_w1_a_v = nn_w1_h[...], nn_w1_a[...]
    nn_w2_v, nn_b2_v = nn_w2[...], nn_b2[...]

    # ---- 16 rounds of g.update_all(edge_network, node_network) -------------
    def body(_, hid):
        # One fused projection of the hidden state for both edge endpoints,
        # split at a 128-lane boundary, then gathered through the one-hots.
        hp = _dot(hid, en_w1_hh_v)                                      # [Np,256]
        e_pre = (en_static
                 + _dot(g_dst, hp[:, :128])
                 + _dot(g_src, hp[:, 128:]))                            # [Ep,128]
        e_h = jnp.maximum(e_pre, 0.0)
        e_rep = jnp.maximum(_dot(e_h, en_w2_v) + en_b2_v, 0.0)          # [Ep, 64]
        # sum of incoming messages per destination node
        aggregated = _dot(agg, e_rep)                                   # [Np, 64]
        # node network
        n_pre = (nn_static + _dot(hid, nn_w1_h_v)
                 + _dot(aggregated, nn_w1_a_v))                         # [Np,128]
        n_h = jnp.maximum(n_pre, 0.0)
        return jnp.maximum(_dot(n_h, nn_w2_v) + nn_b2_v, 0.0)           # [Np, 64]

    hid = jax.lax.fori_loop(0, NUM_ITERS, body, hid0)

    # ---- edge classifier: Linear(133,64)+ReLU -> Linear(64,1)+Sigmoid ------
    c_pre = (_dot(g_dst, _small_proj(nf, ec_w1_df[...]) + _dot(hid, ec_w1_dh[...]))
             + _dot(g_src, _small_proj(nf, ec_w1_sf[...]) + _dot(hid, ec_w1_sh[...]))
             + dist * ec_w1_di[...] + ec_b1[...])                       # [Ep, 64]
    c_h = jnp.maximum(c_pre, 0.0)
    # Dout = 1: cross-lane reduction instead of a degenerate N=1 MXU matmul.
    logits = jnp.sum(c_h * ec_w2_row[...], axis=-1, keepdims=True) + ec_b2[...]
    out_ref[...] = jax.nn.sigmoid(logits)


# ----------------------------------------------------------------------------
# Parameters (deterministic init, PyTorch-Linear-like uniform bounds)
# ----------------------------------------------------------------------------
def _linear_params(key, din, dout):
    kw, kb = jax.random.split(key)
    bound = 1.0 / jnp.sqrt(jnp.float32(din))
    w = jax.random.uniform(kw, (din, dout), jnp.float32, -bound, bound)
    b = jax.random.uniform(kb, (1, dout), jnp.float32, -bound, bound)
    return w, b


def init_params(key):
    ks = jax.random.split(key, 8)
    edge_in = NODEMB * 2 + NODEFEAT * 2 + 1   # 133
    node_in = NODEMB + NODEFEAT + EDGEMB      # 130
    return {
        "node_init":       (*_linear_params(ks[0], NODEFEAT, 128),
                            *_linear_params(ks[1], 128, NODEMB)),
        "edge_network":    (*_linear_params(ks[2], edge_in, 128),
                            *_linear_params(ks[3], 128, EDGEMB)),
        "node_network":    (*_linear_params(ks[4], node_in, 128),
                            *_linear_params(ks[5], 128, NODEMB)),
        "edge_classifier": (*_linear_params(ks[6], edge_in, NODEMB),
                            *_linear_params(ks[7], NODEMB, 1)),
    }


# ----------------------------------------------------------------------------
# Forward pass: one fused pallas_call
# ----------------------------------------------------------------------------
@jax.jit
def classifier_forward(params, node_features, src_idx, dst_idx, dist):
    n_nodes = node_features.shape[0]
    n_edges = src_idx.shape[0]
    n_pad = _round_up(n_nodes, 8)
    e_pad = _round_up(n_edges, 8)
    f32 = jnp.float32

    nf_p = jnp.zeros((n_pad, NODEFEAT), f32).at[:n_nodes].set(node_features.astype(f32))
    dist_p = jnp.zeros((e_pad, 1), f32).at[:n_edges, 0].set(dist.astype(f32))
    g_src = jnp.zeros((e_pad, n_pad), f32).at[:n_edges].set(
        jax.nn.one_hot(src_idx, n_pad, dtype=f32))
    g_dst = jnp.zeros((e_pad, n_pad), f32).at[:n_edges].set(
        jax.nn.one_hot(dst_idx, n_pad, dtype=f32))
    agg_mat = g_dst.T                                    # [Np, Ep]

    ni_w1, ni_b1, ni_w2, ni_b2 = params["node_init"]
    en_w1, en_b1, en_w2, en_b2 = params["edge_network"]
    nn_w1, nn_b1, nn_w2, nn_b2 = params["node_network"]
    ec_w1, ec_b1, ec_w2, ec_b2 = params["edge_classifier"]

    F, H = NODEFEAT, NODEMB
    # split concat-ordered first-layer weights:
    #   edge nets: [dst_feat(2) | dst_hid(64) | src_feat(2) | src_hid(64) | dist(1)]
    #   node net : [hid(64) | node_feat(2) | agg(64)]
    def split_edge_w1(w):
        return (w[0:F], w[F:F + H], w[F + H:2 * F + H],
                w[2 * F + H:2 * F + 2 * H], w[2 * F + 2 * H:])

    en_w1_df, en_w1_dh, en_w1_sf, en_w1_sh, en_w1_di = split_edge_w1(en_w1)
    # Fuse the two per-iteration hidden-state projections into one [64,256] matmul.
    en_w1_hh = jnp.concatenate([en_w1_dh, en_w1_sh], axis=1)            # [64, 256]
    ec_w1_df, ec_w1_dh, ec_w1_sf, ec_w1_sh, ec_w1_di = split_edge_w1(ec_w1)
    nn_w1_h, nn_w1_f, nn_w1_a = nn_w1[0:H], nn_w1[H:H + F], nn_w1[H + F:]

    inputs = [
        nf_p, dist_p, g_src, g_dst, agg_mat,
        ni_w1, ni_b1, ni_w2, ni_b2,
        en_w1_df, en_w1_sf, en_w1_hh, en_w1_di, en_b1, en_w2, en_b2,
        nn_w1_h, nn_w1_f, nn_w1_a, nn_b1, nn_w2, nn_b2,
        ec_w1_df, ec_w1_dh, ec_w1_sf, ec_w1_sh, ec_w1_di, ec_b1, ec_w2.T, ec_b2,
    ]

    def full(shape):
        nd = len(shape)
        return pl.BlockSpec(shape, lambda i, nd=nd: (0,) * nd)

    out = pl.pallas_call(
        _fused_kernel,
        out_shape=jax.ShapeDtypeStruct((e_pad, 1), f32),
        grid=(1,),
        in_specs=[full(x.shape) for x in inputs],
        out_specs=full((e_pad, 1)),
        compiler_params=pltpu.CompilerParams(
            dimension_semantics=("arbitrary",),
            vmem_limit_bytes=64 << 20),
    )(*inputs)
    return out[:n_edges]


# ----------------------------------------------------------------------------
# Pure-JAX reference (matches the PyTorch module's math: concat + full matmul)
# ----------------------------------------------------------------------------
def _edge_inputs(node_features, hid, dist, src_idx, dst_idx):
    dst_feat = jnp.take(node_features, dst_idx, axis=0)
    dst_hid = jnp.take(hid, dst_idx, axis=0)
    src_feat = jnp.take(node_features, src_idx, axis=0)
    src_hid = jnp.take(hid, src_idx, axis=0)
    return jnp.concatenate(
        [dst_feat, dst_hid, src_feat, src_hid, dist[:, None]], axis=1)


def _ref_mlp2(x, w1, b1, w2, b2, final_act):
    h = jnp.maximum(x @ w1 + b1, 0.0)
    y = h @ w2 + b2
    if final_act == "relu":
        return jnp.maximum(y, 0.0)
    return jax.nn.sigmoid(y)


def reference_forward(params, node_features, src_idx, dst_idx, dist):
    n_nodes = node_features.shape[0]
    hid = _ref_mlp2(node_features, *params["node_init"], final_act="relu")
    for _ in range(NUM_ITERS):
        edge_in = _edge_inputs(node_features, hid, dist, src_idx, dst_idx)
        edge_rep = _ref_mlp2(edge_in, *params["edge_network"], final_act="relu")
        aggregated = jax.ops.segment_sum(edge_rep, dst_idx, num_segments=n_nodes)
        node_in = jnp.concatenate([hid, node_features, aggregated], axis=1)
        hid = _ref_mlp2(node_in, *params["node_network"], final_act="relu")
    edge_in = _edge_inputs(node_features, hid, dist, src_idx, dst_idx)
    return _ref_mlp2(edge_in, *params["edge_classifier"], final_act="sigmoid")


# ----------------------------------------------------------------------------
if __name__ == "__main__":
    key = jax.random.PRNGKey(0)
    k_params, k_feat, k_src, k_dst, k_dist = jax.random.split(key, 5)

    N_NODES, N_EDGES = 16, 32
    params = init_params(k_params)
    node_features = jax.random.normal(k_feat, (N_NODES, NODEFEAT), jnp.float32)
    src_idx = jax.random.randint(k_src, (N_EDGES,), 0, N_NODES, jnp.int32)
    dst_idx = jax.random.randint(k_dst, (N_EDGES,), 0, N_NODES, jnp.int32)
    dist = jax.random.uniform(k_dist, (N_EDGES,), jnp.float32)

    out = classifier_forward(params, node_features, src_idx, dst_idx, dist)
    out = jax.block_until_ready(out)

    ref = reference_forward(params, node_features, src_idx, dst_idx, dist)
    assert out.shape == (N_EDGES, 1), out.shape
    max_err = float(jnp.max(jnp.abs(out - ref)))
    assert jnp.allclose(out, ref, atol=1e-3, rtol=1e-3), f"mismatch: {max_err}"

    print("KERNEL_OK")
</pallas_src>

<mosaic_0001>
module attributes {stable_mosaic.version = 11 : i64} {
  func.func @_fused_kernel(%arg0: i32, %arg1: memref<16x2xf32, #tpu.memory_space<vmem>>, %arg2: memref<32x1xf32, #tpu.memory_space<vmem>>, %arg3: memref<32x16xf32, #tpu.memory_space<vmem>>, %arg4: memref<32x16xf32, #tpu.memory_space<vmem>>, %arg5: memref<16x32xf32, #tpu.memory_space<vmem>>, %arg6: memref<2x128xf32, #tpu.memory_space<vmem>>, %arg7: memref<1x128xf32, #tpu.memory_space<vmem>>, %arg8: memref<128x64xf32, #tpu.memory_space<vmem>>, %arg9: memref<1x64xf32, #tpu.memory_space<vmem>>, %arg10: memref<2x128xf32, #tpu.memory_space<vmem>>, %arg11: memref<2x128xf32, #tpu.memory_space<vmem>>, %arg12: memref<64x256xf32, #tpu.memory_space<vmem>>, %arg13: memref<1x128xf32, #tpu.memory_space<vmem>>, %arg14: memref<1x128xf32, #tpu.memory_space<vmem>>, %arg15: memref<128x64xf32, #tpu.memory_space<vmem>>, %arg16: memref<1x64xf32, #tpu.memory_space<vmem>>, %arg17: memref<64x128xf32, #tpu.memory_space<vmem>>, %arg18: memref<2x128xf32, #tpu.memory_space<vmem>>, %arg19: memref<64x128xf32, #tpu.memory_space<vmem>>, %arg20: memref<1x128xf32, #tpu.memory_space<vmem>>, %arg21: memref<128x64xf32, #tpu.memory_space<vmem>>, %arg22: memref<1x64xf32, #tpu.memory_space<vmem>>, %arg23: memref<2x64xf32, #tpu.memory_space<vmem>>, %arg24: memref<64x64xf32, #tpu.memory_space<vmem>>, %arg25: memref<2x64xf32, #tpu.memory_space<vmem>>, %arg26: memref<64x64xf32, #tpu.memory_space<vmem>>, %arg27: memref<1x64xf32, #tpu.memory_space<vmem>>, %arg28: memref<1x64xf32, #tpu.memory_space<vmem>>, %arg29: memref<1x64xf32, #tpu.memory_space<vmem>>, %arg30: memref<1x1xf32, #tpu.memory_space<vmem>>, %arg31: memref<32x1xf32, #tpu.memory_space<vmem>>) attributes {dimension_semantics = [#tpu.dimension_semantics<arbitrary>], iteration_bounds = array<i64: 1>, scalar_prefetch = 0 : i64, scratch_operands = 0 : i64, tpu.core_type = #tpu.core_type<tc>, window_params = [{pipeline_mode = #tpu.pipeline_mode<synchronous>, transform_indices = @transform_0, window_bounds = array<i64: 16, 2>}, {pipeline_mode = #tpu.pipeline_mode<synchronous>, transform_indices = @transform_1, window_bounds = array<i64: 32, 1>}, {pipeline_mode = #tpu.pipeline_mode<synchronous>, transform_indices = @transform_2, window_bounds = array<i64: 32, 16>}, {pipeline_mode = #tpu.pipeline_mode<synchronous>, transform_indices = @transform_3, window_bounds = array<i64: 32, 16>}, {pipeline_mode = #tpu.pipeline_mode<synchronous>, transform_indices = @transform_4, window_bounds = array<i64: 16, 32>}, {pipeline_mode = #tpu.pipeline_mode<synchronous>, transform_indices = @transform_5, window_bounds = array<i64: 2, 128>}, {pipeline_mode = #tpu.pipeline_mode<synchronous>, transform_indices = @transform_6, window_bounds = array<i64: 1, 128>}, {pipeline_mode = #tpu.pipeline_mode<synchronous>, transform_indices = @transform_7, window_bounds = array<i64: 128, 64>}, {pipeline_mode = #tpu.pipeline_mode<synchronous>, transform_indices = @transform_8, window_bounds = array<i64: 1, 64>}, {pipeline_mode = #tpu.pipeline_mode<synchronous>, transform_indices = @transform_9, window_bounds = array<i64: 2, 128>}, {pipeline_mode = #tpu.pipeline_mode<synchronous>, transform_indices = @transform_10, window_bounds = array<i64: 2, 128>}, {pipeline_mode = #tpu.pipeline_mode<synchronous>, transform_indices = @transform_11, window_bounds = array<i64: 64, 256>}, {pipeline_mode = #tpu.pipeline_mode<synchronous>, transform_indices = @transform_12, window_bounds = array<i64: 1, 128>}, {pipeline_mode = #tpu.pipeline_mode<synchronous>, transform_indices = @transform_13, window_bounds = array<i64: 1, 128>}, {pipeline_mode = #tpu.pipeline_mode<synchronous>, transform_indices = @transform_14, window_bounds = array<i64: 128, 64>}, {pipeline_mode = #tpu.pipeline_mode<synchronous>, transform_indices = @transform_15, window_bounds = array<i64: 1, 64>}, {pipeline_mode = #tpu.pipeline_mode<synchronous>, transform_indices = @transform_16, window_bounds = array<i64: 64, 128>}, {pipeline_mode = #tpu.pipeline_mode<synchronous>, transform_indices = @transform_17, window_bounds = array<i64: 2, 128>}, {pipeline_mode = #tpu.pipeline_mode<synchronous>, transform_indices = @transform_18, window_bounds = array<i64: 64, 128>}, {pipeline_mode = #tpu.pipeline_mode<synchronous>, transform_indices = @transform_19, window_bounds = array<i64: 1, 128>}, {pipeline_mode = #tpu.pipeline_mode<synchronous>, transform_indices = @transform_20, window_bounds = array<i64: 128, 64>}, {pipeline_mode = #tpu.pipeline_mode<synchronous>, transform_indices = @transform_21, window_bounds = array<i64: 1, 64>}, {pipeline_mode = #tpu.pipeline_mode<synchronous>, transform_indices = @transform_22, window_bounds = array<i64: 2, 64>}, {pipeline_mode = #tpu.pipeline_mode<synchronous>, transform_indices = @transform_23, window_bounds = array<i64: 64, 64>}, {pipeline_mode = #tpu.pipeline_mode<synchronous>, transform_indices = @transform_24, window_bounds = array<i64: 2, 64>}, {pipeline_mode = #tpu.pipeline_mode<synchronous>, transform_indices = @transform_25, window_bounds = array<i64: 64, 64>}, {pipeline_mode = #tpu.pipeline_mode<synchronous>, transform_indices = @transform_26, window_bounds = array<i64: 1, 64>}, {pipeline_mode = #tpu.pipeline_mode<synchronous>, transform_indices = @transform_27, window_bounds = array<i64: 1, 64>}, {pipeline_mode = #tpu.pipeline_mode<synchronous>, transform_indices = @transform_28, window_bounds = array<i64: 1, 64>}, {pipeline_mode = #tpu.pipeline_mode<synchronous>, transform_indices = @transform_29, window_bounds = array<i64: 1, 1>}, {pipeline_mode = #tpu.pipeline_mode<synchronous>, transform_indices = @transform_30, window_bounds = array<i64: 32, 1>}]} {
    %c0 = arith.constant 0 : index
    %c0_0 = arith.constant 0 : index
    %0 = vector.load %arg1[%c0, %c0_0] : memref<16x2xf32, #tpu.memory_space<vmem>>, vector<16x2xf32>
    %c0_1 = arith.constant 0 : index
    %c0_2 = arith.constant 0 : index
    %1 = vector.load %arg2[%c0_1, %c0_2] : memref<32x1xf32, #tpu.memory_space<vmem>>, vector<32x1xf32>
    %c0_3 = arith.constant 0 : index
    %c0_4 = arith.constant 0 : index
    %2 = vector.load %arg3[%c0_3, %c0_4] : memref<32x16xf32, #tpu.memory_space<vmem>>, vector<32x16xf32>
    %c0_5 = arith.constant 0 : index
    %c0_6 = arith.constant 0 : index
    %3 = vector.load %arg4[%c0_5, %c0_6] : memref<32x16xf32, #tpu.memory_space<vmem>>, vector<32x16xf32>
    %c0_7 = arith.constant 0 : index
    %c0_8 = arith.constant 0 : index
    %4 = vector.load %arg5[%c0_7, %c0_8] : memref<16x32xf32, #tpu.memory_space<vmem>>, vector<16x32xf32>
    %c0_9 = arith.constant 0 : index
    %c0_10 = arith.constant 0 : index
    %5 = vector.load %arg6[%c0_9, %c0_10] : memref<2x128xf32, #tpu.memory_space<vmem>>, vector<2x128xf32>
    %6 = vector.extract_strided_slice %0 {offsets = [0, 0], sizes = [16, 1], strides = [1, 1]} : vector<16x2xf32> to vector<16x1xf32>
    %7 = vector.extract_strided_slice %5 {offsets = [0, 0], sizes = [1, 128], strides = [1, 1]} : vector<2x128xf32> to vector<1x128xf32>
    %8 = vector.broadcast %6 : vector<16x1xf32> to vector<16x128xf32>
    %9 = vector.broadcast %7 : vector<1x128xf32> to vector<16x128xf32>
    %10 = arith.mulf %8, %9 : vector<16x128xf32>
    %11 = vector.extract_strided_slice %0 {offsets = [0, 1], sizes = [16, 1], strides = [1, 1]} : vector<16x2xf32> to vector<16x1xf32>
    %12 = vector.extract_strided_slice %5 {offsets = [1, 0], sizes = [1, 128], strides = [1, 1]} : vector<2x128xf32> to vector<1x128xf32>
    %13 = vector.broadcast %11 : vector<16x1xf32> to vector<16x128xf32>
    %14 = vector.broadcast %12 : vector<1x128xf32> to vector<16x128xf32>
    %15 = arith.mulf %13, %14 : vector<16x128xf32>
    %16 = arith.addf %10, %15 : vector<16x128xf32>
    %c0_11 = arith.constant 0 : index
    %c0_12 = arith.constant 0 : index
    %17 = vector.load %arg7[%c0_11, %c0_12] : memref<1x128xf32, #tpu.memory_space<vmem>>, vector<1x128xf32>
    %18 = vector.broadcast %17 : vector<1x128xf32> to vector<16x128xf32>
    %19 = arith.addf %16, %18 : vector<16x128xf32>
    %cst = arith.constant 0.000000e+00 : f32
    %20 = vector.broadcast %cst : f32 to vector<16x128xf32>
    %21 = arith.maximumf %19, %20 : vector<16x128xf32>
    %c0_13 = arith.constant 0 : index
    %c0_14 = arith.constant 0 : index
    %22 = vector.load %arg8[%c0_13, %c0_14] : memref<128x64xf32, #tpu.memory_space<vmem>>, vector<128x64xf32>
    %cst_15 = arith.constant dense<0.000000e+00> : vector<16x64xf32>
    %23 = tpu.matmul %21, %22, %cst_15 {dimension_numbers = #tpu.dot_dimension_numbers<[1], [0], [0], [1], [0, 0, 1, 1], [], []>} : vector<16x128xf32>, vector<128x64xf32>, vector<16x64xf32> -> vector<16x64xf32>
    %c0_16 = arith.constant 0 : index
    %c0_17 = arith.constant 0 : index
    %24 = vector.load %arg9[%c0_16, %c0_17] : memref<1x64xf32, #tpu.memory_space<vmem>>, vector<1x64xf32>
    %25 = vector.broadcast %24 : vector<1x64xf32> to vector<16x64xf32>
    %26 = arith.addf %23, %25 : vector<16x64xf32>
    %cst_18 = arith.constant 0.000000e+00 : f32
    %27 = vector.broadcast %cst_18 : f32 to vector<16x64xf32>
    %28 = arith.maximumf %26, %27 : vector<16x64xf32>
    %c0_19 = arith.constant 0 : index
    %c0_20 = arith.constant 0 : index
    %29 = vector.load %arg10[%c0_19, %c0_20] : memref<2x128xf32, #tpu.memory_space<vmem>>, vector<2x128xf32>
    %30 = vector.extract_strided_slice %0 {offsets = [0, 0], sizes = [16, 1], strides = [1, 1]} : vector<16x2xf32> to vector<16x1xf32>
    %31 = vector.extract_strided_slice %29 {offsets = [0, 0], sizes = [1, 128], strides = [1, 1]} : vector<2x128xf32> to vector<1x128xf32>
    %32 = vector.broadcast %30 : vector<16x1xf32> to vector<16x128xf32>
    %33 = vector.broadcast %31 : vector<1x128xf32> to vector<16x128xf32>
    %34 = arith.mulf %32, %33 : vector<16x128xf32>
    %35 = vector.extract_strided_slice %0 {offsets = [0, 1], sizes = [16, 1], strides = [1, 1]} : vector<16x2xf32> to vector<16x1xf32>
    %36 = vector.extract_strided_slice %29 {offsets = [1, 0], sizes = [1, 128], strides = [1, 1]} : vector<2x128xf32> to vector<1x128xf32>
    %37 = vector.broadcast %35 : vector<16x1xf32> to vector<16x128xf32>
    %38 = vector.broadcast %36 : vector<1x128xf32> to vector<16x128xf32>
    %39 = arith.mulf %37, %38 : vector<16x128xf32>
    %40 = arith.addf %34, %39 : vector<16x128xf32>
    %cst_21 = arith.constant dense<0.000000e+00> : vector<32x128xf32>
    %41 = tpu.matmul %3, %40, %cst_21 {dimension_numbers = #tpu.dot_dimension_numbers<[1], [0], [0], [1], [0, 0, 1, 1], [], []>} : vector<32x16xf32>, vector<16x128xf32>, vector<32x128xf32> -> vector<32x128xf32>
    %c0_22 = arith.constant 0 : index
    %c0_23 = arith.constant 0 : index
    %42 = vector.load %arg11[%c0_22, %c0_23] : memref<2x128xf32, #tpu.memory_space<vmem>>, vector<2x128xf32>
    %43 = vector.extract_strided_slice %0 {offsets = [0, 0], sizes = [16, 1], strides = [1, 1]} : vector<16x2xf32> to vector<16x1xf32>
    %44 = vector.extract_strided_slice %42 {offsets = [0, 0], sizes = [1, 128], strides = [1, 1]} : vector<2x128xf32> to vector<1x128xf32>
    %45 = vector.broadcast %43 : vector<16x1xf32> to vector<16x128xf32>
    %46 = vector.broadcast %44 : vector<1x128xf32> to vector<16x128xf32>
    %47 = arith.mulf %45, %46 : vector<16x128xf32>
    %48 = vector.extract_strided_slice %0 {offsets = [0, 1], sizes = [16, 1], strides = [1, 1]} : vector<16x2xf32> to vector<16x1xf32>
    %49 = vector.extract_strided_slice %42 {offsets = [1, 0], sizes = [1, 128], strides = [1, 1]} : vector<2x128xf32> to vector<1x128xf32>
    %50 = vector.broadcast %48 : vector<16x1xf32> to vector<16x128xf32>
    %51 = vector.broadcast %49 : vector<1x128xf32> to vector<16x128xf32>
    %52 = arith.mulf %50, %51 : vector<16x128xf32>
    %53 = arith.addf %47, %52 : vector<16x128xf32>
    %cst_24 = arith.constant dense<0.000000e+00> : vector<32x128xf32>
    %54 = tpu.matmul %2, %53, %cst_24 {dimension_numbers = #tpu.dot_dimension_numbers<[1], [0], [0], [1], [0, 0, 1, 1], [], []>} : vector<32x16xf32>, vector<16x128xf32>, vector<32x128xf32> -> vector<32x128xf32>
    %55 = arith.addf %41, %54 : vector<32x128xf32>
    %c0_25 = arith.constant 0 : index
    %c0_26 = arith.constant 0 : index
    %56 = vector.load %arg13[%c0_25, %c0_26] : memref<1x128xf32, #tpu.memory_space<vmem>>, vector<1x128xf32>
    %57 = vector.broadcast %1 : vector<32x1xf32> to vector<32x128xf32>
    %58 = vector.broadcast %56 : vector<1x128xf32> to vector<32x128xf32>
    %59 = arith.mulf %57, %58 : vector<32x128xf32>
    %60 = arith.addf %55, %59 : vector<32x128xf32>
    %c0_27 = arith.constant 0 : index
    %c0_28 = arith.constant 0 : index
    %61 = vector.load %arg14[%c0_27, %c0_28] : memref<1x128xf32, #tpu.memory_space<vmem>>, vector<1x128xf32>
    %62 = vector.broadcast %61 : vector<1x128xf32> to vector<32x128xf32>
    %63 = arith.addf %60, %62 : vector<32x128xf32>
    %c0_29 = arith.constant 0 : index
    %c0_30 = arith.constant 0 : index
    %64 = vector.load %arg18[%c0_29, %c0_30] : memref<2x128xf32, #tpu.memory_space<vmem>>, vector<2x128xf32>
    %65 = vector.extract_strided_slice %0 {offsets = [0, 0], sizes = [16, 1], strides = [1, 1]} : vector<16x2xf32> to vector<16x1xf32>
    %66 = vector.extract_strided_slice %64 {offsets = [0, 0], sizes = [1, 128], strides = [1, 1]} : vector<2x128xf32> to vector<1x128xf32>
    %67 = vector.broadcast %65 : vector<16x1xf32> to vector<16x128xf32>
    %68 = vector.broadcast %66 : vector<1x128xf32> to vector<16x128xf32>
    %69 = arith.mulf %67, %68 : vector<16x128xf32>
    %70 = vector.extract_strided_slice %0 {offsets = [0, 1], sizes = [16, 1], strides = [1, 1]} : vector<16x2xf32> to vector<16x1xf32>
    %71 = vector.extract_strided_slice %64 {offsets = [1, 0], sizes = [1, 128], strides = [1, 1]} : vector<2x128xf32> to vector<1x128xf32>
    %72 = vector.broadcast %70 : vector<16x1xf32> to vector<16x128xf32>
    %73 = vector.broadcast %71 : vector<1x128xf32> to vector<16x128xf32>
    %74 = arith.mulf %72, %73 : vector<16x128xf32>
    %75 = arith.addf %69, %74 : vector<16x128xf32>
    %c0_31 = arith.constant 0 : index
    %c0_32 = arith.constant 0 : index
    %76 = vector.load %arg20[%c0_31, %c0_32] : memref<1x128xf32, #tpu.memory_space<vmem>>, vector<1x128xf32>
    %77 = vector.broadcast %76 : vector<1x128xf32> to vector<16x128xf32>
    %78 = arith.addf %75, %77 : vector<16x128xf32>
    %c0_33 = arith.constant 0 : index
    %c0_34 = arith.constant 0 : index
    %79 = vector.load %arg12[%c0_33, %c0_34] : memref<64x256xf32, #tpu.memory_space<vmem>>, vector<64x256xf32>
    %c0_35 = arith.constant 0 : index
    %c0_36 = arith.constant 0 : index
    %80 = vector.load %arg15[%c0_35, %c0_36] : memref<128x64xf32, #tpu.memory_space<vmem>>, vector<128x64xf32>
    %c0_37 = arith.constant 0 : index
    %c0_38 = arith.constant 0 : index
    %81 = vector.load %arg16[%c0_37, %c0_38] : memref<1x64xf32, #tpu.memory_space<vmem>>, vector<1x64xf32>
    %c0_39 = arith.constant 0 : index
    %c0_40 = arith.constant 0 : index
    %82 = vector.load %arg17[%c0_39, %c0_40] : memref<64x128xf32, #tpu.memory_space<vmem>>, vector<64x128xf32>
    %c0_41 = arith.constant 0 : index
    %c0_42 = arith.constant 0 : index
    %83 = vector.load %arg19[%c0_41, %c0_42] : memref<64x128xf32, #tpu.memory_space<vmem>>, vector<64x128xf32>
    %c0_43 = arith.constant 0 : index
    %c0_44 = arith.constant 0 : index
    %84 = vector.load %arg21[%c0_43, %c0_44] : memref<128x64xf32, #tpu.memory_space<vmem>>, vector<128x64xf32>
    %c0_45 = arith.constant 0 : index
    %c0_46 = arith.constant 0 : index
    %85 = vector.load %arg22[%c0_45, %c0_46] : memref<1x64xf32, #tpu.memory_space<vmem>>, vector<1x64xf32>
    %c0_i32 = arith.constant 0 : i32
    %c16_i32 = arith.constant 16 : i32
    %86 = arith.addi %c0_i32, %c16_i32 : i32
    %c1_i32 = arith.constant 1 : i32
    %87 = scf.for %arg32 = %c0_i32 to %86 step %c1_i32 iter_args(%arg33 = %28) -> (vector<16x64xf32>)  : i32 {
      %cst_72 = arith.constant dense<0.000000e+00> : vector<16x256xf32>
      %145 = tpu.matmul %arg33, %79, %cst_72 {dimension_numbers = #tpu.dot_dimension_numbers<[1], [0], [0], [1], [0, 0, 1, 1], [], []>} : vector<16x64xf32>, vector<64x256xf32>, vector<16x256xf32> -> vector<16x256xf32>
      %146 = vector.extract_strided_slice %145 {offsets = [0, 0], sizes = [16, 128], strides = [1, 1]} : vector<16x256xf32> to vector<16x128xf32>
      %cst_73 = arith.constant dense<0.000000e+00> : vector<32x128xf32>
      %147 = tpu.matmul %3, %146, %cst_73 {dimension_numbers = #tpu.dot_dimension_numbers<[1], [0], [0], [1], [0, 0, 1, 1], [], []>} : vector<32x16xf32>, vector<16x128xf32>, vector<32x128xf32> -> vector<32x128xf32>
      %148 = arith.addf %63, %147 : vector<32x128xf32>
      %149 = vector.extract_strided_slice %145 {offsets = [0, 128], sizes = [16, 128], strides = [1, 1]} : vector<16x256xf32> to vector<16x128xf32>
      %cst_74 = arith.constant dense<0.000000e+00> : vector<32x128xf32>
      %150 = tpu.matmul %2, %149, %cst_74 {dimension_numbers = #tpu.dot_dimension_numbers<[1], [0], [0], [1], [0, 0, 1, 1], [], []>} : vector<32x16xf32>, vector<16x128xf32>, vector<32x128xf32> -> vector<32x128xf32>
      %151 = arith.addf %148, %150 : vector<32x128xf32>
      %cst_75 = arith.constant 0.000000e+00 : f32
      %152 = vector.broadcast %cst_75 : f32 to vector<32x128xf32>
      %153 = arith.maximumf %151, %152 : vector<32x128xf32>
      %cst_76 = arith.constant dense<0.000000e+00> : vector<32x64xf32>
      %154 = tpu.matmul %153, %80, %cst_76 {dimension_numbers = #tpu.dot_dimension_numbers<[1], [0], [0], [1], [0, 0, 1, 1], [], []>} : vector<32x128xf32>, vector<128x64xf32>, vector<32x64xf32> -> vector<32x64xf32>
      %155 = vector.broadcast %81 : vector<1x64xf32> to vector<32x64xf32>
      %156 = arith.addf %154, %155 : vector<32x64xf32>
      %cst_77 = arith.constant 0.000000e+00 : f32
      %157 = vector.broadcast %cst_77 : f32 to vector<32x64xf32>
      %158 = arith.maximumf %156, %157 : vector<32x64xf32>
      %cst_78 = arith.constant dense<0.000000e+00> : vector<16x64xf32>
      %159 = tpu.matmul %4, %158, %cst_78 {dimension_numbers = #tpu.dot_dimension_numbers<[1], [0], [0], [1], [0, 0, 1, 1], [], []>} : vector<16x32xf32>, vector<32x64xf32>, vector<16x64xf32> -> vector<16x64xf32>
      %cst_79 = arith.constant dense<0.000000e+00> : vector<16x128xf32>
      %160 = tpu.matmul %arg33, %82, %cst_79 {dimension_numbers = #tpu.dot_dimension_numbers<[1], [0], [0], [1], [0, 0, 1, 1], [], []>} : vector<16x64xf32>, vector<64x128xf32>, vector<16x128xf32> -> vector<16x128xf32>
      %161 = arith.addf %78, %160 : vector<16x128xf32>
      %cst_80 = arith.constant dense<0.000000e+00> : vector<16x128xf32>
      %162 = tpu.matmul %159, %83, %cst_80 {dimension_numbers = #tpu.dot_dimension_numbers<[1], [0], [0], [1], [0, 0, 1, 1], [], []>} : vector<16x64xf32>, vector<64x128xf32>, vector<16x128xf32> -> vector<16x128xf32>
      %163 = arith.addf %161, %162 : vector<16x128xf32>
      %cst_81 = arith.constant 0.000000e+00 : f32
      %164 = vector.broadcast %cst_81 : f32 to vector<16x128xf32>
      %165 = arith.maximumf %163, %164 : vector<16x128xf32>
      %cst_82 = arith.constant dense<0.000000e+00> : vector<16x64xf32>
      %166 = tpu.matmul %165, %84, %cst_82 {dimension_numbers = #tpu.dot_dimension_numbers<[1], [0], [0], [1], [0, 0, 1, 1], [], []>} : vector<16x128xf32>, vector<128x64xf32>, vector<16x64xf32> -> vector<16x64xf32>
      %167 = vector.broadcast %85 : vector<1x64xf32> to vector<16x64xf32>
      %168 = arith.addf %166, %167 : vector<16x64xf32>
      %cst_83 = arith.constant 0.000000e+00 : f32
      %169 = vector.broadcast %cst_83 : f32 to vector<16x64xf32>
      %170 = arith.maximumf %168, %169 : vector<16x64xf32>
      scf.yield %170 : vector<16x64xf32>
    }
    %c0_47 = arith.constant 0 : index
    %c0_48 = arith.constant 0 : index
    %88 = vector.load %arg23[%c0_47, %c0_48] : memref<2x64xf32, #tpu.memory_space<vmem>>, vector<2x64xf32>
    %89 = vector.extract_strided_slice %0 {offsets = [0, 0], sizes = [16, 1], strides = [1, 1]} : vector<16x2xf32> to vector<16x1xf32>
    %90 = vector.extract_strided_slice %88 {offsets = [0, 0], sizes = [1, 64], strides = [1, 1]} : vector<2x64xf32> to vector<1x64xf32>
    %91 = vector.broadcast %89 : vector<16x1xf32> to vector<16x64xf32>
    %92 = vector.broadcast %90 : vector<1x64xf32> to vector<16x64xf32>
    %93 = arith.mulf %91, %92 : vector<16x64xf32>
    %94 = vector.extract_strided_slice %0 {offsets = [0, 1], sizes = [16, 1], strides = [1, 1]} : vector<16x2xf32> to vector<16x1xf32>
    %95 = vector.extract_strided_slice %88 {offsets = [1, 0], sizes = [1, 64], strides = [1, 1]} : vector<2x64xf32> to vector<1x64xf32>
    %96 = vector.broadcast %94 : vector<16x1xf32> to vector<16x64xf32>
    %97 = vector.broadcast %95 : vector<1x64xf32> to vector<16x64xf32>
    %98 = arith.mulf %96, %97 : vector<16x64xf32>
    %99 = arith.addf %93, %98 : vector<16x64xf32>
    %c0_49 = arith.constant 0 : index
    %c0_50 = arith.constant 0 : index
    %100 = vector.load %arg24[%c0_49, %c0_50] : memref<64x64xf32, #tpu.memory_space<vmem>>, vector<64x64xf32>
    %cst_51 = arith.constant dense<0.000000e+00> : vector<16x64xf32>
    %101 = tpu.matmul %87, %100, %cst_51 {dimension_numbers = #tpu.dot_dimension_numbers<[1], [0], [0], [1], [0, 0, 1, 1], [], []>} : vector<16x64xf32>, vector<64x64xf32>, vector<16x64xf32> -> vector<16x64xf32>
    %102 = arith.addf %99, %101 : vector<16x64xf32>
    %cst_52 = arith.constant dense<0.000000e+00> : vector<32x64xf32>
    %103 = tpu.matmul %3, %102, %cst_52 {dimension_numbers = #tpu.dot_dimension_numbers<[1], [0], [0], [1], [0, 0, 1, 1], [], []>} : vector<32x16xf32>, vector<16x64xf32>, vector<32x64xf32> -> vector<32x64xf32>
    %c0_53 = arith.constant 0 : index
    %c0_54 = arith.constant 0 : index
    %104 = vector.load %arg25[%c0_53, %c0_54] : memref<2x64xf32, #tpu.memory_space<vmem>>, vector<2x64xf32>
    %105 = vector.extract_strided_slice %0 {offsets = [0, 0], sizes = [16, 1], strides = [1, 1]} : vector<16x2xf32> to vector<16x1xf32>
    %106 = vector.extract_strided_slice %104 {offsets = [0, 0], sizes = [1, 64], strides = [1, 1]} : vector<2x64xf32> to vector<1x64xf32>
    %107 = vector.broadcast %105 : vector<16x1xf32> to vector<16x64xf32>
    %108 = vector.broadcast %106 : vector<1x64xf32> to vector<16x64xf32>
    %109 = arith.mulf %107, %108 : vector<16x64xf32>
    %110 = vector.extract_strided_slice %0 {offsets = [0, 1], sizes = [16, 1], strides = [1, 1]} : vector<16x2xf32> to vector<16x1xf32>
    %111 = vector.extract_strided_slice %104 {offsets = [1, 0], sizes = [1, 64], strides = [1, 1]} : vector<2x64xf32> to vector<1x64xf32>
    %112 = vector.broadcast %110 : vector<16x1xf32> to vector<16x64xf32>
    %113 = vector.broadcast %111 : vector<1x64xf32> to vector<16x64xf32>
    %114 = arith.mulf %112, %113 : vector<16x64xf32>
    %115 = arith.addf %109, %114 : vector<16x64xf32>
    %c0_55 = arith.constant 0 : index
    %c0_56 = arith.constant 0 : index
    %116 = vector.load %arg26[%c0_55, %c0_56] : memref<64x64xf32, #tpu.memory_space<vmem>>, vector<64x64xf32>
    %cst_57 = arith.constant dense<0.000000e+00> : vector<16x64xf32>
    %117 = tpu.matmul %87, %116, %cst_57 {dimension_numbers = #tpu.dot_dimension_numbers<[1], [0], [0], [1], [0, 0, 1, 1], [], []>} : vector<16x64xf32>, vector<64x64xf32>, vector<16x64xf32> -> vector<16x64xf32>
    %118 = arith.addf %115, %117 : vector<16x64xf32>
    %cst_58 = arith.constant dense<0.000000e+00> : vector<32x64xf32>
    %119 = tpu.matmul %2, %118, %cst_58 {dimension_numbers = #tpu.dot_dimension_numbers<[1], [0], [0], [1], [0, 0, 1, 1], [], []>} : vector<32x16xf32>, vector<16x64xf32>, vector<32x64xf32> -> vector<32x64xf32>
    %120 = arith.addf %103, %119 : vector<32x64xf32>
    %c0_59 = arith.constant 0 : index
    %c0_60 = arith.constant 0 : index
    %121 = vector.load %arg27[%c0_59, %c0_60] : memref<1x64xf32, #tpu.memory_space<vmem>>, vector<1x64xf32>
    %122 = vector.broadcast %1 : vector<32x1xf32> to vector<32x64xf32>
    %123 = vector.broadcast %121 : vector<1x64xf32> to vector<32x64xf32>
    %124 = arith.mulf %122, %123 : vector<32x64xf32>
    %125 = arith.addf %120, %124 : vector<32x64xf32>
    %c0_61 = arith.constant 0 : index
    %c0_62 = arith.constant 0 : index
    %126 = vector.load %arg28[%c0_61, %c0_62] : memref<1x64xf32, #tpu.memory_space<vmem>>, vector<1x64xf32>
    %127 = vector.broadcast %126 : vector<1x64xf32> to vector<32x64xf32>
    %128 = arith.addf %125, %127 : vector<32x64xf32>
    %cst_63 = arith.constant 0.000000e+00 : f32
    %129 = vector.broadcast %cst_63 : f32 to vector<32x64xf32>
    %130 = arith.maximumf %128, %129 : vector<32x64xf32>
    %c0_64 = arith.constant 0 : index
    %c0_65 = arith.constant 0 : index
    %131 = vector.load %arg29[%c0_64, %c0_65] : memref<1x64xf32, #tpu.memory_space<vmem>>, vector<1x64xf32>
    %132 = vector.broadcast %131 : vector<1x64xf32> to vector<32x64xf32>
    %133 = arith.mulf %130, %132 : vector<32x64xf32>
    %cst_66 = arith.constant dense<0.000000e+00> : vector<32xf32>
    %134 = vector.multi_reduction <add>, %133, %cst_66 [1] : vector<32x64xf32> to vector<32xf32>
    %135 = vector.shape_cast %134 : vector<32xf32> to vector<32x1xf32>
    %c0_67 = arith.constant 0 : index
    %c0_68 = arith.constant 0 : index
    %136 = vector.load %arg30[%c0_67, %c0_68] : memref<1x1xf32, #tpu.memory_space<vmem>>, vector<1x1xf32>
    %137 = vector.broadcast %136 : vector<1x1xf32> to vector<32x1xf32>
    %138 = arith.addf %135, %137 : vector<32x1xf32>
    %139 = arith.negf %138 : vector<32x1xf32>
    %140 = math.exp %139 : vector<32x1xf32>
    %cst_69 = arith.constant 1.000000e+00 : f32
    %141 = vector.broadcast %cst_69 : f32 to vector<32x1xf32>
    %142 = arith.addf %141, %140 : vector<32x1xf32>
    %143 = arith.divf %141, %142 : vector<32x1xf32>
    %c0_70 = arith.constant 0 : index
    %c0_71 = arith.constant 0 : index
    %144 = vector.load %arg31[%c0_70, %c0_71] : memref<32x1xf32, #tpu.memory_space<vmem>>, vector<32x1xf32>
    tpu.vector_store %arg31[%c0_70, %c0_71], %143 {strides = array<i32>} : memref<32x1xf32, #tpu.memory_space<vmem>>, vector<32x1xf32>,
    return
  }
  func.func @transform_0(%arg0: i32) -> (i32, i32) {
    %c0_i32 = arith.constant 0 : i32
    %c0_i32_0 = arith.constant 0 : i32
    %c0_i32_1 = arith.constant 0 : i32
    return %c0_i32, %c0_i32_0 : i32, i32
  }
  func.func @transform_1(%arg0: i32) -> (i32, i32) {
    %c0_i32 = arith.constant 0 : i32
    %c0_i32_0 = arith.constant 0 : i32
    %c0_i32_1 = arith.constant 0 : i32
    return %c0_i32, %c0_i32_0 : i32, i32
  }
  func.func @transform_2(%arg0: i32) -> (i32, i32) {
    %c0_i32 = arith.constant 0 : i32
    %c0_i32_0 = arith.constant 0 : i32
    %c0_i32_1 = arith.constant 0 : i32
    return %c0_i32, %c0_i32_0 : i32, i32
  }
  func.func @transform_3(%arg0: i32) -> (i32, i32) {
    %c0_i32 = arith.constant 0 : i32
    %c0_i32_0 = arith.constant 0 : i32
    %c0_i32_1 = arith.constant 0 : i32
    return %c0_i32, %c0_i32_0 : i32, i32
  }
  func.func @transform_4(%arg0: i32) -> (i32, i32) {
    %c0_i32 = arith.constant 0 : i32
    %c0_i32_0 = arith.constant 0 : i32
    %c0_i32_1 = arith.constant 0 : i32
    return %c0_i32, %c0_i32_0 : i32, i32
  }
  func.func @transform_5(%arg0: i32) -> (i32, i32) {
    %c0_i32 = arith.constant 0 : i32
    %c0_i32_0 = arith.constant 0 : i32
    %c0_i32_1 = arith.constant 0 : i32
    return %c0_i32, %c0_i32_0 : i32, i32
  }
  func.func @transform_6(%arg0: i32) -> (i32, i32) {
    %c0_i32 = arith.constant 0 : i32
    %c0_i32_0 = arith.constant 0 : i32
    %c0_i32_1 = arith.constant 0 : i32
    return %c0_i32, %c0_i32_0 : i32, i32
  }
  func.func @transform_7(%arg0: i32) -> (i32, i32) {
    %c0_i32 = arith.constant 0 : i32
    %c0_i32_0 = arith.constant 0 : i32
    %c0_i32_1 = arith.constant 0 : i32
    return %c0_i32, %c0_i32_0 : i32, i32
  }
  func.func @transform_8(%arg0: i32) -> (i32, i32) {
    %c0_i32 = arith.constant 0 : i32
    %c0_i32_0 = arith.constant 0 : i32
    %c0_i32_1 = arith.constant 0 : i32
    return %c0_i32, %c0_i32_0 : i32, i32
  }
  func.func @transform_9(%arg0: i32) -> (i32, i32) {
    %c0_i32 = arith.constant 0 : i32
    %c0_i32_0 = arith.constant 0 : i32
    %c0_i32_1 = arith.constant 0 : i32
    return %c0_i32, %c0_i32_0 : i32, i32
  }
  func.func @transform_10(%arg0: i32) -> (i32, i32) {
    %c0_i32 = arith.constant 0 : i32
    %c0_i32_0 = arith.constant 0 : i32
    %c0_i32_1 = arith.constant 0 : i32
    return %c0_i32, %c0_i32_0 : i32, i32
  }
  func.func @transform_11(%arg0: i32) -> (i32, i32) {
    %c0_i32 = arith.constant 0 : i32
    %c0_i32_0 = arith.constant 0 : i32
    %c0_i32_1 = arith.constant 0 : i32
    return %c0_i32, %c0_i32_0 : i32, i32
  }
  func.func @transform_12(%arg0: i32) -> (i32, i32) {
    %c0_i32 = arith.constant 0 : i32
    %c0_i32_0 = arith.constant 0 : i32
    %c0_i32_1 = arith.constant 0 : i32
    return %c0_i32, %c0_i32_0 : i32, i32
  }
  func.func @transform_13(%arg0: i32) -> (i32, i32) {
    %c0_i32 = arith.constant 0 : i32
    %c0_i32_0 = arith.constant 0 : i32
    %c0_i32_1 = arith.constant 0 : i32
    return %c0_i32, %c0_i32_0 : i32, i32
  }
  func.func @transform_14(%arg0: i32) -> (i32, i32) {
    %c0_i32 = arith.constant 0 : i32
    %c0_i32_0 = arith.constant 0 : i32
    %c0_i32_1 = arith.constant 0 : i32
    return %c0_i32, %c0_i32_0 : i32, i32
  }
  func.func @transform_15(%arg0: i32) -> (i32, i32) {
    %c0_i32 = arith.constant 0 : i32
    %c0_i32_0 = arith.constant 0 : i32
    %c0_i32_1 = arith.constant 0 : i32
    return %c0_i32, %c0_i32_0 : i32, i32
  }
  func.func @transform_16(%arg0: i32) -> (i32, i32) {
    %c0_i32 = arith.constant 0 : i32
    %c0_i32_0 = arith.constant 0 : i32
    %c0_i32_1 = arith.constant 0 : i32
    return %c0_i32, %c0_i32_0 : i32, i32
  }
  func.func @transform_17(%arg0: i32) -> (i32, i32) {
    %c0_i32 = arith.constant 0 : i32
    %c0_i32_0 = arith.constant 0 : i32
    %c0_i32_1 = arith.constant 0 : i32
    return %c0_i32, %c0_i32_0 : i32, i32
  }
  func.func @transform_18(%arg0: i32) -> (i32, i32) {
    %c0_i32 = arith.constant 0 : i32
    %c0_i32_0 = arith.constant 0 : i32
    %c0_i32_1 = arith.constant 0 : i32
    return %c0_i32, %c0_i32_0 : i32, i32
  }
  func.func @transform_19(%arg0: i32) -> (i32, i32) {
    %c0_i32 = arith.constant 0 : i32
    %c0_i32_0 = arith.constant 0 : i32
    %c0_i32_1 = arith.constant 0 : i32
    return %c0_i32, %c0_i32_0 : i32, i32
  }
  func.func @transform_20(%arg0: i32) -> (i32, i32) {
    %c0_i32 = arith.constant 0 : i32
    %c0_i32_0 = arith.constant 0 : i32
    %c0_i32_1 = arith.constant 0 : i32
    return %c0_i32, %c0_i32_0 : i32, i32
  }
  func.func @transform_21(%arg0: i32) -> (i32, i32) {
    %c0_i32 = arith.constant 0 : i32
    %c0_i32_0 = arith.constant 0 : i32
    %c0_i32_1 = arith.constant 0 : i32
    return %c0_i32, %c0_i32_0 : i32, i32
  }
  func.func @transform_22(%arg0: i32) -> (i32, i32) {
    %c0_i32 = arith.constant 0 : i32
    %c0_i32_0 = arith.constant 0 : i32
    %c0_i32_1 = arith.constant 0 : i32
    return %c0_i32, %c0_i32_0 : i32, i32
  }
  func.func @transform_23(%arg0: i32) -> (i32, i32) {
    %c0_i32 = arith.constant 0 : i32
    %c0_i32_0 = arith.constant 0 : i32
    %c0_i32_1 = arith.constant 0 : i32
    return %c0_i32, %c0_i32_0 : i32, i32
  }
  func.func @transform_24(%arg0: i32) -> (i32, i32) {
    %c0_i32 = arith.constant 0 : i32
    %c0_i32_0 = arith.constant 0 : i32
    %c0_i32_1 = arith.constant 0 : i32
    return %c0_i32, %c0_i32_0 : i32, i32
  }
  func.func @transform_25(%arg0: i32) -> (i32, i32) {
    %c0_i32 = arith.constant 0 : i32
    %c0_i32_0 = arith.constant 0 : i32
    %c0_i32_1 = arith.constant 0 : i32
    return %c0_i32, %c0_i32_0 : i32, i32
  }
  func.func @transform_26(%arg0: i32) -> (i32, i32) {
    %c0_i32 = arith.constant 0 : i32
    %c0_i32_0 = arith.constant 0 : i32
    %c0_i32_1 = arith.constant 0 : i32
    return %c0_i32, %c0_i32_0 : i32, i32
  }
  func.func @transform_27(%arg0: i32) -> (i32, i32) {
    %c0_i32 = arith.constant 0 : i32
    %c0_i32_0 = arith.constant 0 : i32
    %c0_i32_1 = arith.constant 0 : i32
    return %c0_i32, %c0_i32_0 : i32, i32
  }
  func.func @transform_28(%arg0: i32) -> (i32, i32) {
    %c0_i32 = arith.constant 0 : i32
    %c0_i32_0 = arith.constant 0 : i32
    %c0_i32_1 = arith.constant 0 : i32
    return %c0_i32, %c0_i32_0 : i32, i32
  }
  func.func @transform_29(%arg0: i32) -> (i32, i32) {
    %c0_i32 = arith.constant 0 : i32
    %c0_i32_0 = arith.constant 0 : i32
    %c0_i32_1 = arith.constant 0 : i32
    return %c0_i32, %c0_i32_0 : i32, i32
  }
  func.func @transform_30(%arg0: i32) -> (i32, i32) {
    %c0_i32 = arith.constant 0 : i32
    %c0_i32_0 = arith.constant 0 : i32
    %c0_i32_1 = arith.constant 0 : i32
    return %c0_i32, %c0_i32_0 : i32, i32
  }
}

</mosaic_0001>

<bundles_post_ra>
// kernel: classifier_forward.1
= control target key start
LH: loop header
LB: loop body
LE: loop exit
PB: predicated region body
PF: predicated region fallthrough
CT: control target
= control target key end

     0   :  { %v2407_v0 = vmov 0   ;;  %s2408_s6 = smov 4   ;;  %s2409_s10 = smov 11   ;;  %v2418_v17 = vmov 1   ;;  %vm318_vm0 = vcmask 130048   ;;  %s3146_s0 = inlined_call_operand.smem [shape: u32[31], index: -1, kind: input, shape index: {}] }
   0x1   :  { %2363 = vset.pattern.permute.xlu1 %v2407_v0  ;;  %2361 = vset.pattern.permute.xlu0 %v2407_v0  ;;  %s1_s5 = sld [smem:[%s3146_s0]]   ;;  %s2410_s14 = smov 14  }
   0x2   :  { %s1833_s9 = sld [smem:[%s3146_s0 + %s2408_s6]]   ;;  %s2411_s18 = smov 15  }
   0x3   :  { %s2456_s13 = sld [smem:[%s3146_s0 + %s2409_s10]]   ;;  %s2412_s22 = smov 16  }
   0x4   :  { %s2461_s17 = sld [smem:[%s3146_s0 + %s2410_s14]]   ;;  %s2413_s26 = smov 18  }
   0x5   :  { %s2466_s21 = sld [smem:[%s3146_s0 + %s2411_s18]]   ;;  %s2414_s30 = smov 20  }
   0x6   :  { %s2471_s25 = sld [smem:[%s3146_s0 + %s2412_s22]]   ;;  %s2415_s4 = smov 22  }
   0x7   :  { %v129_v1 = vld [vmem:[%s1_s5 + $0x8] sm:$0xff]  ;;  %v128_v2 = vld [vmem:[%s1_s5] sm:$0xff]  ;;  %s2476_s29 = sld [smem:[%s3146_s0 + %s2413_s26]]   ;;  %s2416_s8 = smov 23  }
   0x8   :  { %v2478_v3 = vld [vmem:[%s1833_s9] sm:$0xff]  ;;  %v2480_v4 = vld [vmem:[%s1833_s9 + $0x8] sm:$0xff]  ;;  %152 = vperm.xlu0 %2361, %v129_v1   ;;  %147 = vperm.xlu1 %2363, %v128_v2   ;;  %s2485_s3 = sld [smem:[%s3146_s0 + %s2414_s30]]   ;;  %s2417_s12 = smov 24  }
   0x9   :  { %3220 = vst [vmem:[#allocation3_spill] sm:$0xff] %v2478_v3  ;;  %3221 = vst [vmem:[#allocation4_spill] sm:$0xff] %v2480_v4  ;;  %v2488_v5 = vld [vmem:[%s2456_s13] sm:$0xff]  ;;  %v2491_v6 = vld [vmem:[%s2456_s13 + $0x8] sm:$0xff]  ;;  %s2499_s7 = sld [smem:[%s3146_s0 + %s2415_s4]]   ;;  %s2419_s18 = smov 25  }
   0xa   :  { %3222 = vst [vmem:[#allocation5_spill] sm:$0xff] %v2488_v5  ;;  %3223 = vst [vmem:[#allocation6_spill] sm:$0xff] %v2491_v6  ;;  %v2494_v7 = vld [vmem:[%s2456_s13 + $0x10] sm:$0xff]  ;;  %v2502_v8 = vld [vmem:[%s2456_s13 + $0x18] sm:$0xff]  ;;  %s2513_s11 = sld [smem:[%s3146_s0 + %s2416_s8]]   ;;  %s2420_s23 = smov 26  }
   0xb   :  { %3224 = vst [vmem:[#allocation7_spill] sm:$0xff] %v2494_v7  ;;  %3225 = vst [vmem:[#allocation8_spill] sm:$0xff] %v2502_v8  ;;  %v2505_v9 = vld [vmem:[%s2456_s13 + $0x20] sm:$0xff]  ;;  %v2508_v10 = vld [vmem:[%s2456_s13 + $0x28] sm:$0xff]  ;;  %s2527_s16 = sld [smem:[%s3146_s0 + %s2417_s12]]   ;;  %s2421_s28 = smov 27  }
   0xc   :  { %3226 = vst [vmem:[#allocation9_spill] sm:$0xff] %v2505_v9  ;;  %3227 = vst [vmem:[#allocation10_spill] sm:$0xff] %v2508_v10  ;;  %v2516_v11 = vld [vmem:[%s2456_s13 + $0x30] sm:$0xff]  ;;  %v2519_v12 = vld [vmem:[%s2456_s13 + $0x38] sm:$0xff]  ;;  %2362 = vset.pattern.permute.xlu0 %v2418_v17  ;;  %2364 = vset.pattern.permute.xlu1 %v2418_v17  ;;  %s2541_s22 = sld [smem:[%s3146_s0 + %s2419_s18]]   ;;  %s2423_s8 = smov 29  }
   0xd   :  { %3228 = vst [vmem:[#allocation11_spill] sm:$0xff] %v2516_v11  ;;  %3229 = vst [vmem:[#allocation12_spill] sm:$0xff] %v2519_v12  ;;  %v2522_v13 = vld [vmem:[%s2456_s13 + $0x40] sm:$0xff]  ;;  %v2530_v14 = vld [vmem:[%s2456_s13 + $0x48] sm:$0xff]  ;;  %166 = vperm.xlu0 %2362, %v129_v1   ;;  %162 = vperm.xlu1 %2364, %v128_v2   ;;  %s2555_s27 = sld [smem:[%s3146_s0 + %s2420_s23]]   ;;  %s2424_s14 = smov 30  }
   0xe   :  { %3230 = vst [vmem:[#allocation13_spill] sm:$0xff] %v2522_v13  ;;  %3231 = vst [vmem:[#allocation14_spill] sm:$0xff] %v2530_v14  ;;  %v2533_v15 = vld [vmem:[%s2456_s13 + $0x50] sm:$0xff]  ;;  %v2536_v16 = vld [vmem:[%s2456_s13 + $0x58] sm:$0xff]  ;;  %s2569_s2 = sld [smem:[%s3146_s0 + %s2421_s28]]   ;;  %s2426_s24 = smov 7  }
   0xf   :  { %3232 = vst [vmem:[#allocation15_spill] sm:$0xff] %v2533_v15  ;;  %3233 = vst [vmem:[#allocation16_spill] sm:$0xff] %v2536_v16  ;;  %v2544_v18 = vld [vmem:[%s2456_s13 + $0x60] sm:$0xff]  ;;  %v2547_v19 = vld [vmem:[%s2456_s13 + $0x68] sm:$0xff]  ;;  %s2597_s12 = sld [smem:[%s3146_s0 + %s2423_s8]]   ;;  %s2428_s4 = smov 1  }
  0x10   :  { %v2550_v20 = vld [vmem:[%s2456_s13 + $0x70] sm:$0xff]  ;;  %v2558_v21 = vld [vmem:[%s2456_s13 + $0x78] sm:$0xff]  ;;  %v2561_v22 = vld [vmem:[%s2461_s17] sm:$0xff]  ;;  %s2422_s13 = smov 28   ;;  %s2613_s19 = sld [smem:[%s3146_s0 + %s2424_s14]]  }
  0x11   :  { %3234 = vst [vmem:[#allocation17_spill] sm:$0xff] %v2561_v22  ;;  %v2564_v23 = vld [vmem:[%s2461_s17 + $0x8] sm:$0xff]  ;;  %v2572_v24 = vld [vmem:[%s2461_s17 + $0x10] sm:$0xff]  ;;  %v2575_v25 = vld [vmem:[%s2461_s17 + $0x18] sm:$0xff]  ;;  %s2583_s6 = sld [smem:[%s3146_s0 + %s2422_s13]]   ;;  %2365 = vset.pattern.permute.xlu1 %v2407_v0  ;;  %2366 = vset.pattern.permute.xlu0 %v2407_v0  ;;  %s2429_s9 = smov 17  }
  0x12   :  { %3235 = vst [vmem:[#allocation18_spill] sm:$0xff] %v2564_v23  ;;  %3236 = vst [vmem:[#allocation19_spill] sm:$0xff] %v2572_v24  ;;  %v2578_v26 = vld [vmem:[%s2461_s17 + $0x20] sm:$0xff]  ;;  %v2586_v27 = vld [vmem:[%s2461_s17 + $0x28] sm:$0xff]  ;;  %s2754_s8 = sld [smem:[%s3146_s0 + %s2428_s4]]   ;;  %s2430_s15 = smov 5  }
  0x13   :  { %3237 = vst [vmem:[#allocation20_spill] sm:$0xff] %v2575_v25  ;;  %v2589_v28 = vld [vmem:[%s2461_s17 + $0x30] sm:$0xff]  ;;  %v2592_v29 = vld [vmem:[%s2461_s17 + $0x38] sm:$0xff]  ;;  %v2600_v30 = vld [vmem:[%s2461_s17 + $0x40] sm:$0xff]  ;;  %s1846_s14 = sld [smem:[%s3146_s0 + %s2429_s9]]   ;;  %s2432_s28 = smov 9  }
  0x14   :  { %v2603_v31 = vld [vmem:[%s2461_s17 + $0x48] sm:$0xff]  ;;  %v2606_v32 = vld [vmem:[%s2461_s17 + $0x50] sm:$0xff]  ;;  %v2616_v33 = vld [vmem:[%s2461_s17 + $0x58] sm:$0xff]  ;;  %s1834_s20 = sld [smem:[%s3146_s0 + %s2430_s15]]   ;;  %s2433_s1 = smov 19  }
  0x15   :  { %v2619_v34 = vld [vmem:[%s2461_s17 + $0x60] sm:$0xff]  ;;  %v2622_v35 = vld [vmem:[%s2461_s17 + $0x68] sm:$0xff]  ;;  %v2625_v36 = vld [vmem:[%s2461_s17 + $0x70] sm:$0xff]  ;;  %v66_v48 = vstv %s2597_s12  ;;  %s1838_s30 = sld [smem:[%s3146_s0 + %s2432_s28]]  }
  0x16   :  { %v2628_v37 = vld [vmem:[%s2461_s17 + $0x78] sm:$0xff]  ;;  %v2631_v38 = vld [vmem:[%s2466_s21] ss:$0 sm:$0xff]  ;;  %v2637_v40 = vld [vmem:[%s2471_s25 + $0x8] sm:$0xff]  ;;  %s2425_s17 = smov 21   ;;  %s2431_s21 = smov 10  }
  0x17   :  { %3238 = vst [vmem:[#allocation21_spill] sm:$0xff] %v2631_v38  ;;  %v2634_v39 = vld [vmem:[%s2471_s25] sm:$0xff]  ;;  %3240 = vst [vmem:[#allocation23_spill] sm:$0xff] %v2637_v40  ;;  %v2640_v41 = vld [vmem:[%s2471_s25 + $0x10] sm:$0xff]  ;;  %s2654_s23 = sld [smem:[%s3146_s0 + %s2425_s17]]  }
  0x18   :  { %3239 = vst [vmem:[#allocation22_spill] sm:$0xff] %v2634_v39  ;;  %3241 = vst [vmem:[#allocation24_spill] sm:$0xff] %v2640_v41  ;;  %v2643_v42 = vld [vmem:[%s2471_s25 + $0x18] sm:$0xff]  ;;  %v2646_v43 = vld [vmem:[%s2471_s25 + $0x20] sm:$0xff]  ;;  %s1839_s26 = sld [smem:[%s3146_s0 + %s2431_s21]]  }
  0x19   :  { %3242 = vst [vmem:[#allocation25_spill] sm:$0xff] %v2643_v42  ;;  %3243 = vst [vmem:[#allocation26_spill] sm:$0xff] %v2646_v43  ;;  %v2649_v44 = vld [vmem:[%s2471_s25 + $0x28] sm:$0xff]  ;;  %v2657_v45 = vld [vmem:[%s2471_s25 + $0x30] sm:$0xff] }
  0x1a   :  { %3244 = vst [vmem:[#allocation27_spill] sm:$0xff] %v2649_v44  ;;  %3245 = vst [vmem:[#allocation28_spill] sm:$0xff] %v2657_v45  ;;  %v2660_v46 = vld [vmem:[%s2471_s25 + $0x38] sm:$0xff]  ;;  %v2663_v47 = vld [vmem:[%s2476_s29] sm:$0xff]  ;;  %s2678_s25 = sld [smem:[%s3146_s0 + %s2426_s24]]   ;;  %s2437_s24 = smov 12  }
  0x1b   :  { %3246 = vst [vmem:[#allocation29_spill] sm:$0xff] %v2660_v46  ;;  %3247 = vst [vmem:[#allocation30_spill] sm:$0xff] %v2663_v47  ;;  %v2667_v49 = vld [vmem:[%s2476_s29 + $0x8] sm:$0xff]  ;;  %v2670_v50 = vld [vmem:[%s2476_s29 + $0x10] sm:$0xff] }
  0x1c   :  { %3248 = vst [vmem:[#allocation31_spill] sm:$0xff] %v2667_v49  ;;  %3249 = vst [vmem:[#allocation32_spill] sm:$0xff] %v2670_v50  ;;  %v2673_v51 = vld [vmem:[%s2476_s29 + $0x18] sm:$0xff]  ;;  %v2681_v52 = vld [vmem:[%s2476_s29 + $0x20] sm:$0xff] }
  0x1d   :  { %3250 = vst [vmem:[#allocation33_spill] sm:$0xff] %v2673_v51  ;;  %67 = vst [vmem:[#allocation2] sm:$0x1] %v66_v48  ;;  %v2684_v53 = vld [vmem:[%s2476_s29 + $0x28] sm:$0xff]  ;;  %v2687_v54 = vld [vmem:[%s2476_s29 + $0x30] sm:$0xff] }
  0x1e   :  { %3251 = vst [vmem:[#allocation34_spill] sm:$0xff] %v2681_v52  ;;  %3252 = vst [vmem:[#allocation35_spill] sm:$0xff] %v2684_v53  ;;  %v2690_v55 = vld [vmem:[%s2476_s29 + $0x38] sm:$0xff]  ;;  %v2693_v56 = vld [vmem:[%s2485_s3] sm:$0xff]  ;;  %s2427_s29 = smov 2  }
  0x1f   :  { %3253 = vst [vmem:[#allocation36_spill] sm:$0xff] %v2687_v54  ;;  %3254 = vst [vmem:[#allocation37_spill] sm:$0xff] %v2690_v55  ;;  %v2696_v57 = vld [vmem:[%s2485_s3 + $0x8] sm:$0xff]  ;;  %v2699_v58 = vld [vmem:[%s2485_s3 + $0x10] sm:$0xff]  ;;  %s2746_s13 = sld [smem:[%s3146_s0 + %s2427_s29]]   ;;  %s2438_s29 = smov 13  }
  0x20   :  { %3255 = vst [vmem:[#allocation38_spill] sm:$0xff] %v2693_v56  ;;  %3256 = vst [vmem:[#allocation39_spill] sm:$0xff] %v2696_v57  ;;  %v2702_v59 = vld [vmem:[%s2485_s3 + $0x18] sm:$0xff]  ;;  %v2705_v60 = vld [vmem:[%s2485_s3 + $0x20] sm:$0xff]  ;;  %s1842_s4 = sld [smem:[%s3146_s0 + %s2438_s29]]  }
  0x21   :  { %3257 = vst [vmem:[#allocation40_spill] sm:$0xff] %v2699_v58  ;;  %3258 = vst [vmem:[#allocation41_spill] sm:$0xff] %v2702_v59  ;;  %v2708_v61 = vld [vmem:[%s2485_s3 + $0x28] sm:$0xff]  ;;  %v2711_v62 = vld [vmem:[%s2485_s3 + $0x30] sm:$0xff] }
  0x22   :  { %3259 = vst [vmem:[#allocation42_spill] sm:$0xff] %v2705_v60  ;;  %3260 = vst [vmem:[#allocation43_spill] sm:$0xff] %v2708_v61  ;;  %v2714_v63 = vld [vmem:[%s2485_s3 + $0x38] sm:$0xff]  ;;  %v2717_v0 = vld [vmem:[%s2485_s3 + $0x40] sm:$0xff] }
  0x23   :  { %3261 = vst [vmem:[#allocation44_spill] sm:$0xff] %v2711_v62  ;;  %3262 = vst [vmem:[#allocation45_spill] sm:$0xff] %v2714_v63  ;;  %v2720_v1 = vld [vmem:[%s2485_s3 + $0x48] sm:$0xff]  ;;  %v2723_v2 = vld [vmem:[%s2485_s3 + $0x50] sm:$0xff] }
  0x24   :  { %3263 = vst [vmem:[#allocation46_spill] sm:$0xff] %v2717_v0  ;;  %3264 = vst [vmem:[#allocation47_spill] sm:$0xff] %v2720_v1  ;;  %v2726_v17 = vld [vmem:[%s2485_s3 + $0x58] sm:$0xff]  ;;  %v2729_v48 = vld [vmem:[%s2485_s3 + $0x60] sm:$0xff] }
  0x25   :  { %3265 = vst [vmem:[#allocation48_spill] sm:$0xff] %v2723_v2  ;;  %3266 = vst [vmem:[#allocation49_spill] sm:$0xff] %v2726_v17  ;;  %v2732_v47 = vld [vmem:[%s2485_s3 + $0x68] sm:$0xff]  ;;  %v2735_v49 = vld [vmem:[%s2485_s3 + $0x70] sm:$0xff] }
  0x26   :  { %3267 = vst [vmem:[#allocation50_spill] sm:$0xff] %v2729_v48  ;;  %3268 = vst [vmem:[#allocation51_spill] sm:$0xff] %v2732_v47  ;;  %v2738_v50 = vld [vmem:[%s2485_s3 + $0x78] sm:$0xff]  ;;  %v2741_v51 = vld [vmem:[%s2654_s23] ss:$0 sm:$0xff]  ;;  %s1848_s3 = sld [smem:[%s3146_s0 + %s2433_s1]]  }
  0x27   :  { %3269 = vst [vmem:[#allocation52_spill] sm:$0xff] %v2735_v49  ;;  %3270 = vst [vmem:[#allocation53_spill] sm:$0xff] %v2738_v50  ;;  %v203_v52 = vld [vmem:[%s2678_s25 + $0x78] sm:$0xff]  ;;  %v202_v53 = vld [vmem:[%s2678_s25 + $0x70] sm:$0xff] }
  0x28   :  { %3271 = vst [vmem:[#allocation54_spill] sm:$0xff] %v2741_v51  ;;  %2049 = vmatprep.subr.mxu0 %v203_v52  ;;  %v201_v54 = vld [vmem:[%s2678_s25 + $0x68] sm:$0xff]  ;;  %v200_v51 = vld [vmem:[%s2678_s25 + $0x60] sm:$0xff]  ;;  %v199_v55 = vld [vmem:[%s2678_s25 + $0x58] sm:$0xff] }
  0x29   :  { %2050 = vmatpush3.msra.mxu0 %v203_v52  ;;  %v2759_v52 = vld [vmem:[%s2746_s13] sm:$0xff]  ;;  %v198_v39 = vld [vmem:[%s2678_s25 + $0x50] sm:$0xff]  ;;  %v133_v43 = vld [vmem:[%s2754_s8 + $0x18] sm:$0xff] }
  0x2a   :  { %2051 = vmatprep.subr.mxu0 %v202_v53  ;;  %2088 = vmatprep.mubr.msk.f32.mxu1 %vm318_vm0, %v2759_v52  ;;  %v130_v40 = vld [vmem:[%s2754_s8] sm:$0xff]  ;;  %v132_v42 = vld [vmem:[%s2754_s8 + $0x10] sm:$0xff] }
  0x2b   :  { %2052 = vmatpush3.msra.mxu0 %v202_v53  ;;  %v197_v53 = vld [vmem:[%s2678_s25 + $0x48] sm:$0xff]  ;;  %516 = vperm.xlu1 %2365, %v130_v40   ;;  %v196_v41 = vld [vmem:[%s2678_s25 + $0x40] sm:$0xff] }
  0x2c   :  { %2053 = vmatprep.subr.mxu0 %v201_v54  ;;  %v193_v40 = vld [vmem:[%s2678_s25 + $0x28] sm:$0xff]  ;;  %v288_v56 = vld [vmem:[%s1838_s30] sm:$0x3] }
  0x2d   :  { %2054 = vmatpush3.msra.mxu0 %v201_v54  ;;  %v131_v54 = vld [vmem:[%s2754_s8 + $0x8] sm:$0xff]  ;;  %s2434_s8 = smov 6   ;;  %v1872_v62 = vld [vmem:[%s1848_s3] ss:$0 sm:$0xff] }
  0x2e   :  { %2055 = vmatprep.subr.mxu0 %v200_v51  ;;  %521 = vperm.xlu0 %2366, %v131_v54   ;;  %v190_v54 = vld [vmem:[%s2678_s25 + $0x10] sm:$0xff]  ;;  %s1835_s12 = sld [smem:[%s3146_s0 + %s2434_s8]]  }
  0x2f   :  { %2056 = vmatpush3.msra.mxu0 %v200_v51  ;;  %v195_v51 = vld [vmem:[%s2678_s25 + $0x38] sm:$0xff]  ;;  %526 = vperm.xlu1 %2365, %v132_v42   ;;  %v188_v42 = vld [vmem:[%s2678_s25] sm:$0xff] }
  0x30   :  { %2057 = vmatprep.subr.mxu0 %v199_v55 }
  0x31   :  { %2058 = vmatpush3.msra.mxu0 %v199_v55  ;;  %v194_v55 = vld [vmem:[%s2678_s25 + $0x30] sm:$0xff] }
  0x32   :  { %2059 = vmatprep.subr.mxu0 %v198_v39 }
  0x33   :  { %2060 = vmatpush3.msra.mxu0 %v198_v39  ;;  %531 = vperm.xlu1 %2365, %v133_v43   ;;  %v192_v39 = vld [vmem:[%s2678_s25 + $0x20] sm:$0xff] }
  0x34   :  { %2061 = vmatprep.subr.mxu0 %v197_v53  ;;  %v1860_v1 = vld [vmem:[%s1835_s12] ss:$0 sm:$0xff] }
  0x35   :  { %2062 = vmatpush3.msra.mxu0 %v197_v53  ;;  %v191_v53 = vld [vmem:[%s2678_s25 + $0x18] sm:$0xff] }
  0x36   :  { %2063 = vmatprep.subr.mxu0 %v196_v41 }
  0x37   :  { %2064 = vmatpush3.msra.mxu0 %v196_v41  ;;  %v189_v41 = vld [vmem:[%s2678_s25 + $0x8] sm:$0xff]  ;;  %s1841_s25 = sld [smem:[%s3146_s0 + %s2437_s24]]  }
  0x38   :  { %2065 = vmatprep.subr.mxu0 %v195_v51 }
  0x39   :  { %2066 = vmatpush3.msra.mxu0 %v195_v51  ;;  %v155_v51 = vlaneseq }
  0x3a   :  { %2067 = vmatprep.subr.mxu0 %v194_v55 }
  0x3b   :  { %2068 = vmatpush3.msra.mxu0 %v194_v55  ;;  %v156_v43 = vshrl.u32 %v155_v51, 7 }
  0x3c   :  { %2069 = vmatprep.subr.mxu0 %v193_v40 }
  0x3d   :  { %2070 = vmatpush3.msra.mxu0 %v193_v40  ;;  %v2787_v55 = vsub.s32 0, %v156_v43  ;;  %v559_v40 = vld [vmem:[%s1846_s14] sm:$0x3]  ;;  %s2435_s14 = smov 3  }
  0x3e   :  { %2071 = vmatprep.subr.mxu0 %v192_v39  ;;  %s2834_s17 = sld [smem:[%s3146_s0 + %s2435_s14]]  }
  0x3f   :  { %2072 = vmatpush3.msra.mxu0 %v192_v39  ;;  %3272 = vst [vmem:[#allocation55_spill] sm:$0xff] %v2787_v55  ;;  %v563_v39 = vrot.slane %v559_v40, %v2787_v55  ;;  %v292_v2 = vrot.slane %v288_v56, %v2787_v55 }
  0x40   :  { %2073 = vmatprep.subr.mxu0 %v191_v53 }
  0x41   :  { %2074 = vmatpush3.msra.mxu0 %v191_v53  ;;  %v144_v53 = vld [vmem:[%s1834_s20] sm:$0x3] }
  0x42   :  { %2075 = vmatprep.subr.mxu0 %v190_v54  ;;  %v158_v44 = vrot.slane %v144_v53, %v2787_v55 }
  0x43   :  { %2076 = vmatpush3.msra.mxu0 %v190_v54  ;;  %v2796_v54 = vsub.s32 1, %v156_v43 }
  0x44   :  { %2077 = vmatprep.subr.mxu0 %v189_v41 }
  0x45   :  { %2078 = vmatpush3.msra.mxu0 %v189_v41  ;;  %3273 = vst [vmem:[#allocation56_spill] sm:$0xff] %v2796_v54  ;;  %v303_v41 = vld [vmem:[%s1839_s26] sm:$0x3]  ;;  %v172_v4 = vrot.slane %v144_v53, %v2796_v54  ;;  %v569_v43 = vrot.slane %v559_v40, %v2796_v54  ;;  %v298_v58 = vrot.slane %v288_v56, %v2796_v54 }
  0x46   :  { %2079 = vmatprep.subr.mxu0 %v188_v42  ;;  %v307_v38 = vrot.slane %v303_v41, %v2787_v55  ;;  %v313_v3 = vrot.slane %v303_v41, %v2796_v54 }
  0x47   :  { %2080 = vmatpush3.msra.mxu0 %v188_v42 }
  0x83   :  { %v2801_v42 = vpop.permute.xlu0 %152  ;;  %v2803_v51 = vpop.permute.xlu1 %147 }
  0x84   :  { %3274 = vst [vmem:[#allocation57_spill] sm:$0xff] %v2801_v42  ;;  %3275 = vst [vmem:[#allocation58_spill] sm:$0xff] %v2803_v51  ;;  %v565_v45 = vmul.f32 %v563_v39, %v2801_v42  ;;  %v564_v46 = vmul.f32 %v563_v39, %v2803_v51  ;;  %v160_v57 = vmul.f32 %v158_v44, %v2801_v42 }
  0x85   :  { %v309_v53 = vmul.f32 %v307_v38, %v2801_v42  ;;  %v159_v40 = vmul.f32 %v158_v44, %v2803_v51  ;;  %v308_v50 = vmul.f32 %v307_v38, %v2803_v51  ;;  %v294_v38 = vmul.f32 %v292_v2, %v2801_v42 }
  0x88   :  { %v2814_v59 = vpop.permute.xlu0 %166  ;;  %v2816_v60 = vpop.permute.xlu1 %162 }
  0x89   :  { %3276 = vst [vmem:[#allocation59_spill] sm:$0xff] %v2814_v59  ;;  %3277 = vst [vmem:[#allocation60_spill] sm:$0xff] %v2816_v60  ;;  %v174_v61 = vmul.f32 %v172_v4, %v2814_v59  ;;  %v571_v39 = vmul.f32 %v569_v43, %v2814_v59  ;;  %v570_v41 = vmul.f32 %v569_v43, %v2816_v60 }
  0x8a   :  { %v315_v63 = vmul.f32 %v313_v3, %v2814_v59  ;;  %v314_v0 = vmul.f32 %v313_v3, %v2816_v60  ;;  %v173_v54 = vmul.f32 %v172_v4, %v2816_v60  ;;  %v300_v22 = vmul.f32 %v298_v58, %v2814_v59 }
  0x8b   :  { %v573_v17 = vadd.f32 %v571_v39, %v565_v45  ;;  %v176_v48 = vadd.f32 %v174_v61, %v160_v57  ;;  %v572_v47 = vadd.f32 %v570_v41, %v564_v46  ;;  %v299_v46 = vmul.f32 %v298_v58, %v2816_v60  ;;  %v2841_v57 = vld [vmem:[%s2746_s13 + $0x8] sm:$0xff]  ;;  %v2855_v58 = vld [vmem:[%s2834_s17] sm:$0xff] }
  0x8c   :  { %v317_v49 = vadd.f32 %v315_v63, %v309_v53  ;;  %v175_v44 = vadd.f32 %v173_v54, %v159_v40  ;;  %v316_v4 = vadd.f32 %v314_v0, %v308_v50  ;;  %v293_v63 = vmul.f32 %v292_v2, %v2803_v51  ;;  %v2845_v50 = vld [vmem:[%s2746_s13 + $0x10] sm:$0xff]  ;;  %v2872_v0 = vld [vmem:[%s2834_s17 + $0x18] sm:$0xff] }
  0x8d   :  { %v2829_v43 = vadd.f32 %v1872_v62, %v573_v17  ;;  %v185_v23 = vadd.f32 %v1860_v1, %v176_v48  ;;  %v2836_v3 = vadd.f32 %v1872_v62, %v572_v47  ;;  %v302_v47 = vadd.f32 %v300_v22, %v294_v38  ;;  %v2862_v22 = vld [vmem:[%s2834_s17 + $0x8] sm:$0xff]  ;;  %v2865_v62 = vld [vmem:[%s2834_s17 + $0x10] sm:$0xff] }
  0x8e   :  { %2084 = vmatprep.subr.mxu1 %v317_v49  ;;  %v184_v45 = vadd.f32 %v1860_v1, %v175_v44 }
  0x8f   :  { %3278 = vst [vmem:[#allocation61_spill] sm:$0xff] %v2829_v43  ;;  %3279 = vst [vmem:[#allocation62_spill] sm:$0xff] %v2836_v3  ;;  %2085 = vmatpush3.msra.mxu1 %v317_v49  ;;  %v187_v56 = vmax.f32 %v185_v23, 0.0  ;;  %v301_v23 = vadd.f32 %v299_v46, %v293_v63  ;;  %v2852_v49 = vld [vmem:[%s2746_s13 + $0x18] sm:$0xff]  ;;  %s2436_s13 = smov 8  }
  0x90   :  { %2086 = vmatprep.subr.mxu1 %v316_v4  ;;  %v186_v61 = vmax.f32 %v184_v45, 0.0  ;;  %s1837_s23 = sld [smem:[%s3146_s0 + %s2436_s13]]   ;;  %v1870_v46 = vld [vmem:[%s1841_s25] ss:$0 sm:$0xff]  ;;  %s2909_s0 = smov 0  }
  0x91   :  { %2087 = vmatpush3.msra.mxu1 %v316_v4 }
  0x92   :  { %2081 = vmatprep.mubr.f32.mxu0 %v186_v61  ;;  %2089 = vmatmul.mubr.msk.f32.vlgmr.msra.gmra.mxu1 %vm318_vm0, %v2841_v57 }
  0x93   :  { %2094 = vmatprep.subr.mxu1 %v302_v47  ;;  %2082 = vmatmul.mubr.f32.vlgmr.msra.gmra.mxu0 %v187_v56 }
  0x94   :  { %2095 = vmatpush3.msra.mxu1 %v302_v47  ;;  %2091 = vmatprep.mubr.msk.f32.mxu1 %vm318_vm0, %v2845_v50 }
  0x95   :  { %2096 = vmatprep.subr.mxu1 %v301_v23 }
  0x96   :  { %2097 = vmatpush3.msra.mxu1 %v301_v23  ;;  %v1861_v2 = vld [vmem:[%s1837_s23] ss:$0 sm:$0xff] }
  0x97   :  { %2092 = vmatmul.mubr.msk.f32.gmra.mxu1 %vm318_vm0, %v2852_v49 }
  0x98   :  { %2098 = vmatprep.mubr.msk.f32.mxu1 %vm318_vm0, %v2855_v58 }
  0x9b   :  { %2099 = vmatmul.mubr.msk.f32.vlgmr.msra.gmra.mxu1 %vm318_vm0, %v2862_v22 }
  0x9c   :  { %2101 = vmatprep.mubr.msk.f32.mxu1 %vm318_vm0, %v2865_v62 }
  0x9f   :  { %2102 = vmatmul.mubr.msk.f32.gmra.mxu1 %vm318_vm0, %v2872_v0 }
  0xa6   :  { %v2879_v1 = vpop.permute.xlu1 %516 }
  0xa7   :  { %3280 = vst [vmem:[#allocation63_spill] sm:$0xff] %v2879_v1  ;;  %v540_v51 = vmul.f32 %v1870_v46, %v2879_v1 }
  0xa9   :  { %v2889_v45 = vpop.permute.xlu0 %521 }
  0xaa   :  { %v2887_v44 = vpop.permute.xlu1 %526  ;;  %3281 = vst [vmem:[#allocation64_spill] sm:$0xff] %v2889_v45  ;;  %v541_v61 = vmul.f32 %v1870_v46, %v2889_v45 }
  0xab   :  { %v542_v45 = vmul.f32 %v1870_v46, %v2887_v44 }
  0xae   :  { %v2892_v23 = vpop.permute.xlu1 %531 }
  0xaf   :  { %v543_v59 = vmul.f32 %v1870_v46, %v2892_v23 }
 0x152   :  { %v2090_v17 = vpop.f32.mrf.mxu1 }
 0x153   :  { %v2083_v48 = vpop.f32.mrf.mxu0 }
 0x154   :  { %v283_v54 = vadd.f32 %v2083_v48, %v1861_v2  ;;  %v397_v39 = vpop.f32.mrf.mxu1  ;;  %v1871_v48 = vld [vmem:[%s1842_s4] ss:$0 sm:$0xff] }
 0x155   :  { %v277_v53 = vpop.f32.mrf.mxu0 }
 0x156   :  { %v287_v40 = vmax.f32 %v283_v54, 0.0   ;;  %v278_v41 = vadd.f32 %v1861_v2, %v277_v53 }
 0x157   :  { %v2093_v4 = vpop.f32.mrf.mxu1 }
 0x158   :  { %v286_v38 = vmax.f32 %v278_v41, 0.0  }
 0x159   :  { %v407_v56 = vpop.f32.mrf.mxu1 }
 0x15b   :  { %v2100_v63 = vpop.f32.mrf.mxu1 }
 0x15c   :  { %v500_v47 = vadd.f32 %v2100_v63, %v2090_v17 }
 0x15d   :  { %v494_v60 = vpop.f32.mrf.mxu1 }
 0x15e   :  { %v545_v54 = vadd.f32 %v541_v61, %v500_v47  ;;  %v495_v2 = vadd.f32 %v494_v60, %v397_v39 }
 0x15f   :  { %v2103_v53 = vpop.f32.mrf.mxu1 }
 0x160   :  { %v2896_v42 = vadd.f32 %v1871_v48, %v545_v54  ;;  %v544_v41 = vadd.f32 %v540_v51, %v495_v2  ;;  %v510_v55 = vadd.f32 %v2103_v53, %v2093_v4 }
 0x161   :  { %v504_v3 = vpop.f32.mrf.mxu1 }
 0x162   :  { %v2899_v43 = vadd.f32 %v1871_v48, %v544_v41  ;;  %v547_v17 = vadd.f32 %v543_v59, %v510_v55  ;;  %v505_v63 = vadd.f32 %v504_v3, %v407_v56 }
 0x164   :  { %v2901_v24 = vadd.f32 %v1871_v48, %v547_v17  ;;  %v546_v25 = vadd.f32 %v542_v45, %v505_v63 }
 0x166   :  { %v2903_v1 = vadd.f32 %v1871_v48, %v546_v25 }
 0x168   :  { %3282 = vst [vmem:[#allocation65_spill] sm:$0xff] %v2903_v1 }
 0x169 LB: > { %680 = vmatprep.subr.mxu0 %v2558_v21  ;;  %2118 = vmatprep.mubr.msk.f32.mxu1 %vm318_vm0, %v2759_v52  ;;  %v2439_v25 = vmov 0.0   ;;  %v3283_v16 = vld [vmem:[#allocation16_spill] sm:$0xff]  ;;  %v3284_v15 = vld [vmem:[#allocation15_spill] sm:$0xff]  ;;  %v3285_v14 = vld [vmem:[#allocation14_spill] sm:$0xff]  ;;  %vm657_vm1 = vcmask 523264   ;;  %vm1018_vm2 = vcmask 261120   ;;  %s2405_s0 = sphi %s2909_s0, %s654_s0   ;;  %v2401_v38 = vphi %v286_v38, %v3342_v38   ;;  %v2397_v40 = vphi %v287_v40, %v3341_v40  }
 0x16a   : > { %681 = vmatpush1.msra.mxu0 %v2550_v20  ;;  %728 = vmatprep.mubr.f32.mxu0 %v2439_v25  ;;  %v3286_v13 = vld [vmem:[#allocation13_spill] sm:$0xff]  ;;  %v3287_v12 = vld [vmem:[#allocation12_spill] sm:$0xff]  ;;  %v3288_v11 = vld [vmem:[#allocation11_spill] sm:$0xff]  ;;  %s654_s0 = sadd.s32 1, %s2405_s0  }
 0x16b   : > { %682 = vmatprep.subr.mxu0 %v2547_v19  ;;  %v3289_v10 = vld [vmem:[#allocation10_spill] sm:$0xff]  ;;  %v3290_v9 = vld [vmem:[#allocation9_spill] sm:$0xff]  ;;  %v3291_v8 = vld [vmem:[#allocation8_spill] sm:$0xff]  ;;  %p651_p0 = scmp.ge.s32.totalorder %s654_s0, 16  }
 0x16c   : > { %683 = vmatpush1.msra.mxu0 %v2544_v18  ;;  %v3292_v7 = vld [vmem:[#allocation7_spill] sm:$0xff]  ;;  %v3293_v6 = vld [vmem:[#allocation6_spill] sm:$0xff]  ;;  %v3294_v5 = vld [vmem:[#allocation5_spill] sm:$0xff]  ;;  %vm1810_vm3 = vcmask (%p651_p0), 7168  }
 0x16d   : > { %684 = vmatprep.subr.mxu0 %v3283_v16  ;;  %v3295_v3 = vld [vmem:[#allocation20_spill] sm:$0xff]  ;;  %v3296_v39 = vld [vmem:[#allocation19_spill] sm:$0xff]  ;;  %v3297_v4 = vld [vmem:[#allocation18_spill] sm:$0xff] }
 0x16e   : > { %685 = vmatpush1.msra.mxu0 %v3284_v15  ;;  %v3298_v45 = vld [vmem:[#allocation17_spill] sm:$0xff]  ;;  %v1472_v18 = vld [vmem:[%s2541_s22 + $0x28] sm:$0xff] (%p651_p0)  ;;  %v1364_v19 = vld [vmem:[%s2513_s11 + $0x20] sm:$0xff] (%p651_p0) }
 0x16f   : > { %686 = vmatprep.subr.mxu0 %v3285_v14  ;;  %v3299_v46 = vld [vmem:[#allocation53_spill] sm:$0xff]  ;;  %v3340_v14 = vld [vmem:[#allocation54_spill] sm:$0xff] }
 0x170   : > { %687 = vmatpush1.msra.mxu0 %v3286_v13  ;;  %v3300_v1 = vld [vmem:[#allocation65_spill] sm:$0xff]  ;;  %v1471_v20 = vld [vmem:[%s2541_s22 + $0x20] sm:$0xff] (%p651_p0) }
 0x171   : > { %688 = vmatprep.subr.mxu0 %v3287_v12  ;;  %v1363_v21 = vld [vmem:[%s2513_s11 + $0x18] sm:$0xff] (%p651_p0) }
 0x172   : > { %689 = vmatpush1.msra.mxu0 %v3288_v11 }
 0x173   : > { %690 = vmatprep.subr.mxu0 %v3289_v10 }
 0x174   : > { %691 = vmatpush1.msra.mxu0 %v3290_v9 }
 0x175   : > { %692 = vmatprep.subr.mxu0 %v3291_v8 }
 0x176   : > { %693 = vmatpush1.msra.mxu0 %v3292_v7 }
 0x177   : > { %694 = vmatprep.subr.mxu0 %v3293_v6 }
 0x178   : > { %695 = vmatpush1.msra.mxu0 %v3294_v5 }
 0x179   : > { %1873 = vmatmul.mubr.msk.f32.vlgmr.msra.gmra.mxu0 %vm657_vm1, %v2401_v38 }
 0x17a   : > { %734 = vmatprep.mubr.f32.mxu0 %v2439_v25 }
 0x17d   : > { %1874 = vmatmul.mubr.msk.f32.gmra.mxu0 %vm657_vm1, %v2397_v40 }
 0x17e   : > { %2108 = vmatprep.mubr.msk.f32.mxu0 %vm318_vm0, %v2855_v58 }
 0x239   : > { %v730_v59 = vpop.f32.mrf.mxu0 }
 0x23b   : > { %v732_v60 = vpop.f32.mrf.mxu0 }
 0x23d   : > { %v736_v55 = vpop.f32.mrf.mxu0 }
 0x23e   : > { %2104 = vmatprep.subr.mxu0 %v736_v55 }
 0x23f   : > { %v738_v51 = vpop.f32.mrf.mxu0  ;;  %2105 = vmatpush3.msra.mxu0 %v736_v55 }
 0x240   : > { %2106 = vmatprep.subr.mxu0 %v730_v59  ;;  %2114 = vmatprep.subr.mxu1 %v738_v51 }
 0x241   : > { %2107 = vmatpush3.msra.mxu0 %v730_v59  ;;  %2115 = vmatpush3.msra.mxu1 %v738_v51 }
 0x242   : > { %2109 = vmatmul.mubr.msk.f32.vlgmr.msra.gmra.mxu0 %vm318_vm0, %v2862_v22  ;;  %2116 = vmatprep.subr.mxu1 %v732_v60 }
 0x243   : > { %2117 = vmatpush3.msra.mxu1 %v732_v60  ;;  %2111 = vmatprep.mubr.msk.f32.mxu0 %vm318_vm0, %v2865_v62 }
 0x244   : > { %2119 = vmatmul.mubr.msk.f32.vlgmr.msra.gmra.mxu1 %vm318_vm0, %v2841_v57  ;;  %2124 = vmatprep.subr.mxu1 %v2628_v37 }
 0x245   : > { %2121 = vmatprep.mubr.msk.f32.mxu1 %vm318_vm0, %v2845_v50  ;;  %2125 = vmatpush3.msra.mxu1 %v2628_v37 }
 0x246   : > { %2112 = vmatmul.mubr.msk.f32.gmra.mxu0 %vm318_vm0, %v2872_v0  ;;  %2126 = vmatprep.subr.mxu1 %v2625_v36 }
 0x247   : > { %2127 = vmatpush3.msra.mxu1 %v2625_v36  ;;  %v3344_v36 = vld [vmem:[#allocation56_spill] sm:$0xff] (%p651_p0) }
 0x248   : > { %2122 = vmatmul.mubr.msk.f32.gmra.mxu1 %vm318_vm0, %v2852_v49  ;;  %2128 = vmatprep.subr.mxu1 %v2622_v35 }
 0x249   : > { %2129 = vmatpush3.msra.mxu1 %v2622_v35 }
 0x24a   : > { %2130 = vmatprep.subr.mxu1 %v2619_v34 }
 0x24b   : > { %2131 = vmatpush3.msra.mxu1 %v2619_v34  ;;  %v3343_v34 = vld [vmem:[#allocation55_spill] sm:$0xff] (%p651_p0) }
 0x24c   : > { %2132 = vmatprep.subr.mxu1 %v2616_v33 }
 0x24d   : > { %2133 = vmatpush3.msra.mxu1 %v2616_v33  ;;  %v1452_v33 = vld [vmem:[%s2527_s16] sm:$0x3] (%p651_p0) }
 0x24e   : > { %2134 = vmatprep.subr.mxu1 %v2606_v32 }
 0x24f   : > { %2135 = vmatpush3.msra.mxu1 %v2606_v32  ;;  %v1345_v32 = vld [vmem:[%s2499_s7] sm:$0x3] (%p651_p0) }
 0x250   : > { %2136 = vmatprep.subr.mxu1 %v2603_v31  ;;  %v1349_v35 = vrot.slane (%p651_p0), %v1345_v32, %v3343_v34  ;;  %v1355_v37 = vrot.slane (%p651_p0), %v1345_v32, %v3344_v36 }
 0x251   : > { %2137 = vmatpush3.msra.mxu1 %v2603_v31  ;;  %v1467_v31 = vld [vmem:[%s2541_s22] sm:$0xff] (%p651_p0) }
 0x252   : > { %2138 = vmatprep.subr.mxu1 %v2600_v30 }
 0x253   : > { %2139 = vmatpush3.msra.mxu1 %v2600_v30  ;;  %v1360_v30 = vld [vmem:[%s2513_s11] sm:$0xff] (%p651_p0) }
 0x254   : > { %2140 = vmatprep.subr.mxu1 %v2592_v29 }
 0x255   : > { %2141 = vmatpush3.msra.mxu1 %v2592_v29  ;;  %v1468_v29 = vld [vmem:[%s2541_s22 + $0x8] sm:$0xff] (%p651_p0) }
 0x256   : > { %2142 = vmatprep.subr.mxu1 %v2589_v28 }
 0x257   : > { %2143 = vmatpush3.msra.mxu1 %v2589_v28  ;;  %v1361_v28 = vld [vmem:[%s2513_s11 + $0x8] sm:$0xff] (%p651_p0) }
 0x258   : > { %2144 = vmatprep.subr.mxu1 %v2586_v27 }
 0x259   : > { %2145 = vmatpush3.msra.mxu1 %v2586_v27  ;;  %v1469_v27 = vld [vmem:[%s2541_s22 + $0x10] sm:$0xff] (%p651_p0) }
 0x25a   : > { %2146 = vmatprep.subr.mxu1 %v2578_v26 }
 0x25b   : > { %2147 = vmatpush3.msra.mxu1 %v2578_v26  ;;  %v1362_v26 = vld [vmem:[%s2513_s11 + $0x10] sm:$0xff] (%p651_p0) }
 0x25c   : > { %2148 = vmatprep.subr.mxu1 %v3295_v3 }
 0x25d   : > { %2149 = vmatpush3.msra.mxu1 %v3295_v3 }
 0x25e   : > { %2150 = vmatprep.subr.mxu1 %v3296_v39 }
 0x25f   : > { %2151 = vmatpush3.msra.mxu1 %v3296_v39  ;;  %v3345_v39 = vld [vmem:[#allocation57_spill] sm:$0xff] (%p651_p0) }
 0x260   : > { %2152 = vmatprep.subr.mxu1 %v3297_v4 }
 0x261   : > { %2153 = vmatpush3.msra.mxu1 %v3297_v4 }
 0x262   : > { %2154 = vmatprep.subr.mxu1 %v3298_v45 }
 0x263   : > { %2155 = vmatpush3.msra.mxu1 %v3298_v45  ;;  %v1351_v45 = vmul.f32 (%p651_p0), %v1349_v35, %v3345_v39 }
 0x264   : > { %2211 = vmatprep.subr.mxu1 %v3299_v46 }
 0x302   : > { %v2110_v56 = vpop.f32.mrf.mxu0 }
 0x303   : > { %v827_v61 = vadd.f32 %v2110_v56, %v2896_v42  ;;  %v1456_v42 = vrot.slane (%p651_p0), %v1452_v33, %v3343_v34 }
 0x304   : > { %v807_v47 = vpop.f32.mrf.mxu0  ;;  %v2120_v48 = vpop.f32.mrf.mxu1 }
 0x305   : > { %v826_v54 = vadd.f32 %v807_v47, %v2899_v43  ;;  %v916_v2 = vadd.f32 %v2120_v48, %v827_v61  ;;  %v3301_v47 = vld [vmem:[#allocation52_spill] sm:$0xff]  ;;  %v3302_v48 = vld [vmem:[#allocation51_spill] sm:$0xff]  ;;  %v1462_v43 = vrot.slane (%p651_p0), %v1452_v33, %v3344_v36 }
 0x306   : > { %v2113_v53 = vpop.f32.mrf.mxu0  ;;  %v896_v41 = vpop.f32.mrf.mxu1 }
 0x307   : > { %v829_v17 = vadd.f32 %v2113_v53, %v2901_v24  ;;  %v915_v63 = vadd.f32 %v896_v41, %v826_v54  ;;  %v920_v51 = vmax.f32 %v916_v2, 0.0  ;;  %v3303_v54 = vld [vmem:[#allocation50_spill] sm:$0xff]  ;;  %v3308_v53 = vld [vmem:[#allocation45_spill] sm:$0xff]  ;;  %v3309_v41 = vld [vmem:[#allocation44_spill] sm:$0xff] }
 0x308   : > { %v817_v25 = vpop.f32.mrf.mxu0  ;;  %v2123_v59 = vpop.f32.mrf.mxu1  ;;  %v3307_v2 = vld [vmem:[#allocation46_spill] sm:$0xff] }
 0x309   : > { %v919_v60 = vmax.f32 %v915_v63, 0.0  ;;  %v828_v55 = vadd.f32 %v817_v25, %v3300_v1  ;;  %v918_v3 = vadd.f32 %v2123_v59, %v829_v17  ;;  %v3310_v17 = vld [vmem:[#allocation43_spill] sm:$0xff]  ;;  %v3311_v63 = vld [vmem:[#allocation42_spill] sm:$0xff]  ;;  %v3312_v25 = vld [vmem:[#allocation41_spill] sm:$0xff] }
 0x30a   : > { %v906_v4 = vpop.f32.mrf.mxu1  ;;  %v3313_v59 = vld [vmem:[#allocation40_spill] sm:$0xff]  ;;  %v1470_v24 = vld [vmem:[%s2541_s22 + $0x18] sm:$0xff] (%p651_p0) }
 0x30b   : > { %v917_v5 = vadd.f32 %v906_v4, %v828_v55  ;;  %2156 = vmatprep.mubr.f32.mxu1 %v919_v60  ;;  %v922_v61 = vmax.f32 %v918_v3, 0.0  ;;  %v3304_v4 = vld [vmem:[#allocation49_spill] sm:$0xff]  ;;  %v3306_v3 = vld [vmem:[#allocation47_spill] sm:$0xff]  ;;  %v3315_v55 = vld [vmem:[#allocation38_spill] sm:$0xff] }
 0x30c   : > { %2157 = vmatmul.mubr.f32.vlgmr.msra.gmra.mxu1 %v920_v51  ;;  %v3314_v60 = vld [vmem:[#allocation39_spill] sm:$0xff] }
 0x30d   : > { %v921_v56 = vmax.f32 %v917_v5, 0.0  ;;  %2212 = vmatpush3.msra.mxu1 %v3299_v46  ;;  %v3305_v5 = vld [vmem:[#allocation48_spill] sm:$0xff]  ;;  %v3316_v51 = vld [vmem:[#allocation3_spill] sm:$0xff] }
 0x30e   : > { %2213 = vmatprep.subr.mxu1 %v3301_v47  ;;  %2170 = vmatprep.mubr.msk.f32.mxu0 %vm1018_vm2, %v3316_v51  ;;  %v3346_v46 = vld [vmem:[#allocation59_spill] sm:$0xff] (%p651_p0) }
 0x30f   : > { %2159 = vmatprep.mubr.f32.mxu1 %v921_v56  ;;  %2214 = vmatpush3.msra.mxu1 %v3301_v47  ;;  %v1458_v47 = vmul.f32 (%p651_p0), %v1456_v42, %v3345_v39 }
 0x310   : > { %2160 = vmatmul.mubr.f32.gmra.mxu1 %v922_v61  ;;  %2215 = vmatprep.subr.mxu1 %v3302_v48 }
 0x311   : > { %2216 = vmatpush3.msra.mxu1 %v3302_v48  ;;  %v3347_v48 = vld [vmem:[#allocation58_spill] sm:$0xff] (%p651_p0) }
 0x312   : > { %2217 = vmatprep.subr.mxu1 %v3303_v54 }
 0x313   : > { %2218 = vmatpush3.msra.mxu1 %v3303_v54  ;;  %v3348_v54 = vld [vmem:[#allocation60_spill] sm:$0xff] (%p651_p0) }
 0x314   : > { %2219 = vmatprep.subr.mxu1 %v3304_v4 }
 0x315   : > { %2220 = vmatpush3.msra.mxu1 %v3304_v4 }
 0x316   : > { %2221 = vmatprep.subr.mxu1 %v3305_v5 }
 0x317   : > { %2222 = vmatpush3.msra.mxu1 %v3305_v5 }
 0x318   : > { %2223 = vmatprep.subr.mxu1 %v3306_v3 }
 0x319   : > { %2224 = vmatpush3.msra.mxu1 %v3306_v3 }
 0x31a   : > { %2225 = vmatprep.subr.mxu1 %v3307_v2 }
 0x31b   : > { %2226 = vmatpush3.msra.mxu1 %v3307_v2  ;;  %v3317_v2 = vld [vmem:[#allocation21_spill] sm:$0xff] }
 0x31c   : > { %2227 = vmatprep.subr.mxu1 %v3308_v53 }
 0x31d   : > { %2228 = vmatpush3.msra.mxu1 %v3308_v53  ;;  %v1457_v53 = vmul.f32 (%p651_p0), %v1456_v42, %v3347_v48 }
 0x31e   : > { %2229 = vmatprep.subr.mxu1 %v3309_v41 }
 0x31f   : > { %2230 = vmatpush3.msra.mxu1 %v3309_v41  ;;  %v1463_v41 = vmul.f32 (%p651_p0), %v1462_v43, %v3348_v54 }
 0x320   : > { %2231 = vmatprep.subr.mxu1 %v3310_v17 }
 0x321   : > { %2232 = vmatpush3.msra.mxu1 %v3310_v17 }
 0x322   : > { %2233 = vmatprep.subr.mxu1 %v3311_v63 }
 0x323   : > { %2234 = vmatpush3.msra.mxu1 %v3311_v63 }
 0x324   : > { %2235 = vmatprep.subr.mxu1 %v3312_v25 }
 0x325   : > { %2236 = vmatpush3.msra.mxu1 %v3312_v25 }
 0x326   : > { %2237 = vmatprep.subr.mxu1 %v3313_v59 }
 0x327   : > { %2238 = vmatpush3.msra.mxu1 %v3313_v59  ;;  %v1465_v59 = vadd.f32 (%p651_p0), %v1463_v41, %v1457_v53 }
 0x328   : > { %2239 = vmatprep.subr.mxu1 %v3314_v60 }
 0x329   : > { %2240 = vmatpush3.msra.mxu1 %v3314_v60 }
 0x32a   : > { %2241 = vmatprep.subr.mxu1 %v3315_v55 }
 0x32b   : > { %2242 = vmatpush3.msra.mxu1 %v3315_v55 }
 0x3cc   : > { %v2158_v56 = vpop.f32.mrf.mxu1 }
 0x3cd   : > { %v1001_v5 = vadd.f32 %v2158_v56, %v3317_v2  ;;  %v3319_v56 = vld [vmem:[#allocation29_spill] sm:$0xff] }
 0x3ce   : > { %v995_v61 = vpop.f32.mrf.mxu1 }
 0x3cf   : > { %v996_v8 = vadd.f32 %v3317_v2, %v995_v61  ;;  %v1015_v10 = vmax.f32 %v1001_v5, 0.0  ;;  %v3327_v5 = vld [vmem:[#allocation22_spill] sm:$0xff]  ;;  %v3329_v61 = vld [vmem:[#allocation36_spill] sm:$0xff] }
 0x3d0   : > { %v2161_v1 = vpop.f32.mrf.mxu1 }
 0x3d1   : > { %v1011_v3 = vadd.f32 %v2161_v1, %v3317_v2  ;;  %v1014_v51 = vmax.f32 %v996_v8, 0.0  ;;  %v3318_v1 = vld [vmem:[#allocation4_spill] sm:$0xff]  ;;  %v3322_v8 = vld [vmem:[#allocation26_spill] sm:$0xff] }
 0x3d2   : > { %v1005_v4 = vpop.f32.mrf.mxu1 }
 0x3d3   : > { %v1017_v6 = vmax.f32 %v1011_v3, 0.0  ;;  %v1006_v7 = vadd.f32 %v3317_v2, %v1005_v4  ;;  %v3328_v3 = vld [vmem:[#allocation37_spill] sm:$0xff] }
 0x3d5   : > { %v1016_v9 = vmax.f32 %v1006_v7, 0.0  ;;  %2162 = vmatprep.subr.mxu0 %v1017_v6  ;;  %v3320_v7 = vld [vmem:[#allocation28_spill] sm:$0xff] }
 0x3d6   : > { %2163 = vmatpush3.msra.mxu0 %v1017_v6  ;;  %v3321_v6 = vld [vmem:[#allocation27_spill] sm:$0xff] }
 0x3d7   : > { %2164 = vmatprep.subr.mxu0 %v1016_v9 }
 0x3d8   : > { %2165 = vmatpush3.msra.mxu0 %v1016_v9  ;;  %v3323_v9 = vld [vmem:[#allocation25_spill] sm:$0xff] }
 0x3d9   : > { %2166 = vmatprep.subr.mxu0 %v1015_v10 }
 0x3da   : > { %2167 = vmatpush3.msra.mxu0 %v1015_v10  ;;  %v3324_v10 = vld [vmem:[#allocation24_spill] sm:$0xff] }
 0x3db   : > { %2168 = vmatprep.subr.mxu0 %v1014_v51 }
 0x3dc   : > { %2169 = vmatpush3.msra.mxu0 %v1014_v51  ;;  %v3330_v51 = vld [vmem:[#allocation35_spill] sm:$0xff] }
 0x3dd   : > { %2171 = vmatmul.mubr.msk.f32.vlgmr.msra.gmra.mxu0 %vm1018_vm2, %v3318_v1  ;;  %2173 = vmatprep.subr.mxu0 %v3319_v56  ;;  %v3331_v1 = vld [vmem:[#allocation34_spill] sm:$0xff] }
 0x3de   : > { %2174 = vmatpush3.msra.mxu0 %v3319_v56  ;;  %2189 = vmatprep.mubr.msk.f32.mxu0 %vm657_vm1, %v2401_v38  ;;  %v3325_v38 = vld [vmem:[#allocation23_spill] sm:$0xff] }
 0x3df   : > { %2175 = vmatprep.subr.mxu0 %v3320_v7  ;;  %v3326_v4 = vmov %v3325_v38 }
 0x3e0   : > { %2176 = vmatpush3.msra.mxu0 %v3320_v7 }
 0x3e1   : > { %2177 = vmatprep.subr.mxu0 %v3321_v6 }
 0x3e2   : > { %2178 = vmatpush3.msra.mxu0 %v3321_v6 }
 0x3e3   : > { %2179 = vmatprep.subr.mxu0 %v3322_v8 }
 0x3e4   : > { %2180 = vmatpush3.msra.mxu0 %v3322_v8 }
 0x3e5   : > { %2181 = vmatprep.subr.mxu0 %v3323_v9 }
 0x3e6   : > { %2182 = vmatpush3.msra.mxu0 %v3323_v9 }
 0x3e7   : > { %2183 = vmatprep.subr.mxu0 %v3324_v10 }
 0x3e8   : > { %2184 = vmatpush3.msra.mxu0 %v3324_v10 }
 0x3e9   : > { %2185 = vmatprep.subr.mxu0 %v3325_v38  ;;  %v3332_v38 = vld [vmem:[#allocation33_spill] sm:$0xff] }
 0x3ea   : > { %2186 = vmatpush3.msra.mxu0 %v3326_v4  ;;  %v3333_v2 = vmov %v3332_v38  ;;  %v3334_v4 = vld [vmem:[#allocation32_spill] sm:$0xff] }
 0x3eb   : > { %2187 = vmatprep.subr.mxu0 %v3327_v5 }
 0x3ec   : > { %2188 = vmatpush3.msra.mxu0 %v3327_v5  ;;  %v3337_v5 = vld [vmem:[#allocation30_spill] sm:$0xff] }
 0x3ed   : > { %2192 = vmatprep.subr.mxu0 %v3328_v3  ;;  %2190 = vmatmul.mubr.msk.f32.vlgmr.msra.gmra.mxu0 %vm657_vm1, %v2397_v40  ;;  %v3335_v40 = vld [vmem:[#allocation31_spill] sm:$0xff] }
 0x3ee   : > { %2193 = vmatpush3.msra.mxu0 %v3328_v3  ;;  %v3336_v3 = vmov %v3335_v40 }
 0x3ef   : > { %2194 = vmatprep.subr.mxu0 %v3329_v61 }
 0x3f0   : > { %2195 = vmatpush3.msra.mxu0 %v3329_v61  ;;  %v3349_v61 = vld [vmem:[#allocation64_spill] sm:$0xff] (%p651_p0) }
 0x3f1   : > { %2196 = vmatprep.subr.mxu0 %v3330_v51 }
 0x3f2   : > { %2197 = vmatpush3.msra.mxu0 %v3330_v51 }
 0x3f3   : > { %2198 = vmatprep.subr.mxu0 %v3331_v1 }
 0x3f4   : > { %2199 = vmatpush3.msra.mxu0 %v3331_v1 }
 0x3f5   : > { %2200 = vmatprep.subr.mxu0 %v3332_v38 }
 0x3f6   : > { %2201 = vmatpush3.msra.mxu0 %v3333_v2  ;;  %v3338_v2 = vld [vmem:[#allocation61_spill] sm:$0xff] }
 0x3f7   : > { %2202 = vmatprep.subr.mxu0 %v3334_v4 }
 0x3f8   : > { %2203 = vmatpush3.msra.mxu0 %v3334_v4  ;;  %v3339_v4 = vld [vmem:[#allocation62_spill] sm:$0xff] }
 0x3f9   : > { %2204 = vmatprep.subr.mxu0 %v3335_v40 }
 0x3fa   : > { %2205 = vmatpush3.msra.mxu0 %v3336_v3 }
 0x3fb   : > { %2206 = vmatprep.subr.mxu0 %v3337_v5 }
 0x3fc   : > { %2207 = vmatpush3.msra.mxu0 %v3337_v5 }
 0x49d   : > { %v2172_v6 = vpop.f32.mrf.mxu0 }
 0x49f   : > { %v1091_v7 = vpop.f32.mrf.mxu0 }
 0x4a0   : > { %2208 = vmatprep.mubr.msk.f32.mxu0 %vm657_vm1, %v1091_v7 }
 0x4a1   : > { %2209 = vmatmul.mubr.msk.f32.vlgmr.msra.gmra.mxu0 %vm657_vm1, %v2172_v6 }
 0x4ad   : > { %v2191_v38 = vpop.f32.mrf.mxu0 }
 0x4ae   : > { %v1176_v8 = vadd.f32 %v2191_v38, %v3338_v2  ;;  %v1356_v2 = vmul.f32 (%p651_p0), %v1355_v37, %v3348_v54 }
 0x4af   : > { %v1166_v1 = vpop.f32.mrf.mxu0 }
 0x4b0   : > { %v1175_v10 = vadd.f32 %v1166_v1, %v3339_v4 }
 0x561   : > { %v2210_v9 = vpop.f32.mrf.mxu0 }
 0x562   : > { %v1259_v40 = vadd.f32 %v2210_v9, %v1176_v8 }
 0x563   : > { %v1249_v11 = vpop.f32.mrf.mxu0 }
 0x564   : > { %v1258_v3 = vadd.f32 %v1249_v11, %v1175_v10  ;;  %v1261_v13 = vmax.f32 %v1259_v40, 0.0  ;;  %v1367_v11 = vld [vmem:[%s2513_s11 + $0x38] sm:$0xff] (%p651_p0) }
 0x565   :  { %2246 = vmatprep.subr.mxu0 (%p651_p0), %v1367_v11 }
 0x566   : > { %v1260_v12 = vmax.f32 %v1258_v3, 0.0  ;;  %2247 = vmatpush3.msra.mxu0 (%p651_p0), %v1367_v11  ;;  %v1903_v3 = vld [vmem:[%s2555_s27] ss:$0 sm:$0xff] (%p651_p0) }
 0x567   :  { %v1730_v51 = vmul.f32 (%p651_p0), %v1903_v3, %v3349_v61 }
 0x568   : > { %2243 = vmatprep.mubr.f32.mxu1 %v1260_v12  ;;  %v1474_v12 = vld [vmem:[%s2541_s22 + $0x38] sm:$0xff] (%p651_p0) }
 0x569   : > { %2244 = vmatmul.mubr.f32.vlgmr.msra.gmra.mxu1 %v1261_v13  ;;  %v1366_v13 = vld [vmem:[%s2513_s11 + $0x30] sm:$0xff] (%p651_p0)  ;;  %2265 = vmatprep.subr.mxu1 (%p651_p0), %v1474_v12 }
 0x56a   :  { %2266 = vmatpush3.msra.mxu1 (%p651_p0), %v1474_v12  ;;  %2248 = vmatprep.subr.mxu0 (%p651_p0), %v1366_v13 }
 0x56b   :  { %2249 = vmatpush3.msra.mxu0 (%p651_p0), %v1366_v13 }
 0x629   : > { %v2245_v5 = vpop.f32.mrf.mxu1 }
 0x62a   : > { %v1340_v15 = vadd.f32 %v2245_v5, %v3340_v14 }
 0x62b   : > { %v1334_v7 = vpop.f32.mrf.mxu1 }
 0x62c   : > { %v1344_v16 = vmax.f32 %v1340_v15, 0.0   ;;  %v1335_v6 = vadd.f32 %v3340_v14, %v1334_v7  ;;  %653 = sbr.rel (!%p651_p0) target bundleno = 361 (0x169), region = 177  ;;  %v1473_v15 = vld [vmem:[%s2541_s22 + $0x30] sm:$0xff] (%p651_p0)  ;;  %v1365_v14 = vld [vmem:[%s2513_s11 + $0x28] sm:$0xff] (%p651_p0) }
 0x62d   :  { %2267 = vmatprep.subr.mxu1 (%p651_p0), %v1473_v15  ;;  %2250 = vmatprep.subr.mxu0 (%p651_p0), %v1365_v14 }
 0x62e   : > { %v1343_v17 = vmax.f32 %v1335_v6, 0.0   ;;  %v3341_v40 = vmov %v1344_v16  ;;  %2268 = vmatpush3.msra.mxu1 (%p651_p0), %v1473_v15  ;;  %2251 = vmatpush3.msra.mxu0 (%p651_p0), %v1365_v14  ;;  %v1731_v14 = vmul.f32 (%p651_p0), %v1903_v3, %v2887_v44 }
 0x62f   :  { %2269 = vmatprep.subr.mxu1 (%p651_p0), %v1472_v18  ;;  %2252 = vmatprep.subr.mxu0 (%p651_p0), %v1364_v19  ;;  %v3350_v40 = vld [vmem:[#allocation63_spill] sm:$0xff] (%p651_p0) }
 0x630   : > { %v3342_v38 = vmov %v1343_v17  ;;  %2262 = vmatprep.mubr.msk.f32.mxu0 (%p651_p0), %vm657_vm1, %v1343_v17  ;;  %2281 = vmatprep.mubr.msk.f32.mxu1 (%p651_p0), %vm657_vm1, %v1343_v17 }
 0x631   :  { %2270 = vmatpush3.msra.mxu1 %v1472_v18  ;;  %2253 = vmatpush3.msra.mxu0 %v1364_v19 }
 0x632   :  { %2271 = vmatprep.subr.mxu1 %v1471_v20  ;;  %2254 = vmatprep.subr.mxu0 %v1363_v21 }
 0x633   :  { %2272 = vmatpush3.msra.mxu1 %v1471_v20  ;;  %2255 = vmatpush3.msra.mxu0 %v1363_v21 }
 0x634   :  { %2273 = vmatprep.subr.mxu1 %v1470_v24  ;;  %2256 = vmatprep.subr.mxu0 %v1362_v26 }
 0x635   :  { %2274 = vmatpush3.msra.mxu1 %v1470_v24  ;;  %2257 = vmatpush3.msra.mxu0 %v1362_v26 }
 0x636   :  { %2275 = vmatprep.subr.mxu1 %v1469_v27  ;;  %2258 = vmatprep.subr.mxu0 %v1361_v28 }
 0x637   :  { %2276 = vmatpush3.msra.mxu1 %v1469_v27  ;;  %2259 = vmatpush3.msra.mxu0 %v1361_v28 }
 0x638   :  { %2277 = vmatprep.subr.mxu1 %v1468_v29  ;;  %2260 = vmatprep.subr.mxu0 %v1360_v30 }
 0x639   :  { %2278 = vmatpush3.msra.mxu1 %v1468_v29  ;;  %2261 = vmatpush3.msra.mxu0 %v1360_v30 }
 0x63a   :  { %2279 = vmatprep.subr.mxu1 %v1467_v31  ;;  %2263 = vmatmul.mubr.msk.f32.vlgmr.msra.gmra.mxu0 %vm657_vm1, %v1344_v16 }
 0x63b   :  { %2280 = vmatpush3.msra.mxu1 %v1467_v31  ;;  %2288 = vmatprep.mubr.msk.f32.mxu0 %vm318_vm0, %v2759_v52  ;;  %v1464_v52 = vmul.f32 %v1462_v43, %v3346_v46  ;;  %v1905_v31 = vld [vmem:[%s2583_s6] ss:$0 sm:$0xff] }
 0x63c   :  { %2282 = vmatmul.mubr.msk.f32.vlgmr.msra.gmra.mxu1 %vm657_vm1, %v1344_v16  ;;  %v1357_v16 = vmul.f32 %v1355_v37, %v3346_v46 }
 0x63d   :  { %2298 = vmatprep.mubr.msk.f32.mxu1 %vm318_vm0, %v2855_v58  ;;  %v1350_v58 = vmul.f32 %v1349_v35, %v3347_v48  ;;  %v1466_v63 = vadd.f32 %v1464_v52, %v1458_v47 }
 0x63e   :  { %v1359_v17 = vadd.f32 %v1357_v16, %v1351_v45  ;;  %v1906_v45 = vld [vmem:[#allocation2] ss:$0 sm:$0xff] }
 0x63f   :  { %v1358_v25 = vadd.f32 %v1356_v2, %v1350_v58 }
 0x6fa   :  { %v2264_v60 = vpop.f32.mrf.mxu0 }
 0x6fb   :  { %v1451_v56 = vadd.f32 %v2264_v60, %v1359_v17 }
 0x6fc   :  { %v2283_v55 = vpop.f32.mrf.mxu1  ;;  %v1441_v9 = vpop.f32.mrf.mxu0 }
 0x6fd   :  { %v1551_v8 = vadd.f32 %v2283_v55, %v1466_v63  ;;  %v1450_v4 = vadd.f32 %v1441_v9, %v1358_v25  ;;  %2294 = vmatprep.subr.mxu1 %v1451_v56 }
 0x6fe   :  { %v1541_v10 = vpop.f32.mrf.mxu1  ;;  %2295 = vmatpush3.msra.mxu1 %v1451_v56 }
 0x6ff   :  { %v1550_v5 = vadd.f32 %v1541_v10, %v1465_v59  ;;  %2284 = vmatprep.subr.mxu0 %v1551_v8  ;;  %2296 = vmatprep.subr.mxu1 %v1450_v4 }
 0x700   :  { %2285 = vmatpush3.msra.mxu0 %v1551_v8  ;;  %2297 = vmatpush3.msra.mxu1 %v1450_v4 }
 0x701   :  { %2286 = vmatprep.subr.mxu0 %v1550_v5  ;;  %2299 = vmatmul.mubr.msk.f32.vlgmr.msra.gmra.mxu1 %vm318_vm0, %v2862_v22  ;;  %v1729_v22 = vmul.f32 %v1903_v3, %v3350_v40 }
 0x702   :  { %2287 = vmatpush3.msra.mxu0 %v1550_v5  ;;  %2301 = vmatprep.mubr.msk.f32.mxu1 %vm318_vm0, %v2865_v62  ;;  %v1732_v62 = vmul.f32 %v1903_v3, %v2892_v23 }
 0x703   :  { %2289 = vmatmul.mubr.msk.f32.vlgmr.msra.gmra.mxu0 %vm318_vm0, %v2841_v57 }
 0x704   :  { %2291 = vmatprep.mubr.msk.f32.mxu0 %vm318_vm0, %v2845_v50  ;;  %v1904_v50 = vld [vmem:[%s2569_s2] ss:$0 sm:$0xff] }
 0x705   :  { %2302 = vmatmul.mubr.msk.f32.gmra.mxu1 %vm318_vm0, %v2872_v0 }
 0x707   :  { %2292 = vmatmul.mubr.msk.f32.gmra.mxu0 %vm318_vm0, %v2852_v49 }
 0x7c1   :  { %v2300_v57 = vpop.f32.mrf.mxu1 }
 0x7c3   :  { %v2290_v1 = vpop.f32.mrf.mxu0  ;;  %v1703_v6 = vpop.f32.mrf.mxu1 }
 0x7c4   :  { %v1709_v38 = vadd.f32 %v2300_v57, %v2290_v1 }
 0x7c5   :  { %v1618_v7 = vpop.f32.mrf.mxu0  ;;  %v2303_v13 = vpop.f32.mrf.mxu1 }
 0x7c6   :  { %v1734_v11 = vadd.f32 %v1730_v51, %v1709_v38  ;;  %v1704_v12 = vadd.f32 %v1703_v6, %v1618_v7 }
 0x7c7   :  { %v2293_v49 = vpop.f32.mrf.mxu0  ;;  %v1713_v20 = vpop.f32.mrf.mxu1 }
 0x7c8   :  { %v1733_v15 = vadd.f32 %v1729_v22, %v1704_v12  ;;  %v1719_v0 = vadd.f32 %v2303_v13, %v2293_v49  ;;  %v1745_v18 = vadd.f32 %v1904_v50, %v1734_v11 }
 0x7c9   :  { %v1628_v19 = vpop.f32.mrf.mxu0 }
 0x7ca   :  { %v1736_v21 = vadd.f32 %v1732_v62, %v1719_v0  ;;  %v1714_v24 = vadd.f32 %v1713_v20, %v1628_v19  ;;  %v1744_v26 = vadd.f32 %v1904_v50, %v1733_v15  ;;  %v1749_v29 = vmax.f32 %v1745_v18, 0.0 }
 0x7cc   :  { %v1735_v27 = vadd.f32 %v1731_v14, %v1714_v24  ;;  %v1748_v28 = vmax.f32 %v1744_v26, 0.0  ;;  %v1747_v30 = vadd.f32 %v1904_v50, %v1736_v21  ;;  %v1760_v35 = vmul.f32 %v1905_v31, %v1749_v29 }
 0x7ce   :  { %v1759_v32 = vmul.f32 %v1905_v31, %v1748_v28  ;;  %v1746_v23 = vadd.f32 %v1904_v50, %v1735_v27  ;;  %v1751_v36 = vmax.f32 %v1747_v30, 0.0  ;;  %v1766_v42 = vsel %vm657_vm1, %v1760_v35, 0.0 }
 0x7d0   :  { %v1763_v33 = vsel %vm657_vm1, %v1759_v32, 0.0  ;;  %v1750_v34 = vmax.f32 %v1746_v23, 0.0  ;;  %v1762_v43 = vmul.f32 %v1905_v31, %v1751_v36 }
 0x7d1   :  { %1764 = vadd.xlane.f32.xlu0 %v1763_v33 }
 0x7d2   :  { %v1761_v44 = vmul.f32 %v1905_v31, %v1750_v34  ;;  %v1772_v39 = vsel %vm657_vm1, %v1762_v43, 0.0 }
 0x7d4   :  { %v1769_v37 = vsel %vm657_vm1, %v1761_v44, 0.0 }
 0x7d5   :  { %1770 = vadd.xlane.f32.xlu1 %v1769_v37  ;;  %1767 = vadd.xlane.f32.xlu0 %v1766_v42 }
 0x7d9   :  { %1773 = vadd.xlane.f32.xlu1 %v1772_v39 }
 0x85a   :  { %v1765_v46 = vpop.xlane.xlu0 %1764 }
 0x85b   :  { %v1782_v16 = vadd.f32 %v1906_v45, %v1765_v46 }
 0x85d   :  { %v1907_v47 = vmul.f32 -1.442695, %v1782_v16 }
 0x85e   :  { %v1771_v52 = vpop.xlane.xlu1 %1770  ;;  %v1768_v48 = vpop.xlane.xlu0 %1767 }
 0x85f   :  { %2367 = vpow2.f32 %v1907_v47  ;;  %v1784_v58 = vadd.f32 %v1906_v45, %v1771_v52  ;;  %v1783_v54 = vadd.f32 %v1906_v45, %v1768_v48 }
 0x861   :  { %v1909_v2 = vmul.f32 -1.442695, %v1784_v58  ;;  %v1908_v53 = vmul.f32 -1.442695, %v1783_v54 }
 0x862   :  { %v1774_v41 = vpop.xlane.xlu1 %1773 }
 0x863   :  { %2369 = vpow2.f32 %v1909_v2  ;;  %v1785_v17 = vadd.f32 %v1906_v45, %v1774_v41 }
 0x864   :  { %2371 = vpow2.f32 %v1908_v53 }
 0x865   :  { %v1910_v63 = vmul.f32 -1.442695, %v1785_v17 }
 0x867   :  { %2373 = vpow2.f32 %v1910_v63 }
 0x86c   :  { %v2368_v25 = vpop.eup %2367 }
 0x86d   :  { %v1798_v59 = vadd.f32 1.0, %v2368_v25 }
 0x86f   :  { %2375 = vrcp.f32 %v1798_v59 }
 0x870   :  { %v2370_v60 = vpop.eup %2369 }
 0x871   :  { %v2372_v55 = vpop.eup %2371  ;;  %v1800_v56 = vadd.f32 1.0, %v2370_v60 }
 0x872   :  { %v1799_v8 = vadd.f32 1.0, %v2372_v55 }
 0x873   :  { %2377 = vrcp.f32 %v1800_v56 }
 0x874   :  { %v2374_v9 = vpop.eup %2373  ;;  %2379 = vrcp.f32 %v1799_v8 }
 0x875   :  { %v1801_v10 = vadd.f32 1.0, %v2374_v9 }
 0x877   :  { %2381 = vrcp.f32 %v1801_v10 }
 0x87c   :  { %v2376_v4 = vpop.eup %2375 }
 0x87d   :  { %1811 = vst.msk [vmem:[%s2613_s19] sm:$0xff] %vm1810_vm3, %v2376_v4 }
 0x880   :  { %v2378_v5 = vpop.eup %2377 }
 0x881   :  { %v2380_v3 = vpop.eup %2379  ;;  %1813 = vst.msk [vmem:[%s2613_s19 + $0x10] sm:$0xff] %vm1810_vm3, %v2378_v5 }
 0x882   :  { %1812 = vst.msk [vmem:[%s2613_s19 + $0x8] sm:$0xff] %vm1810_vm3, %v2380_v3 }
 0x884   :  { %v2382_v61 = vpop.eup %2381 }
 0x885   :  { %1814 = vst.msk [vmem:[%s2613_s19 + $0x18] sm:$0xff] %vm1810_vm3, %v2382_v61 }

</bundles_post_ra>
